<compile_context>
chip_gen: v6e
topology: v6e:2x2x1
jax: 0.10.0
libtpu: 0.0.40
codegen_flags: <defaults>
</compile_context>

<pallas_src>
import functools

import numpy as np
import jax
import jax.numpy as jnp
from jax.experimental import pallas as pl


# ----------------------------------------------------------------------------
# Fused Pallas kernel
# ----------------------------------------------------------------------------
def _outer_accum(x, w):
    """x: [M, K] (tiny K), w: [K, N] -> x @ w as K rank-1 updates (VPU only)."""
    acc = x[:, 0:1] * w[0:1, :]
    for k in range(1, x.shape[1]):
        acc = acc + x[:, k:k + 1] * w[k:k + 1, :]
    return acc


def _fused_kernel(p1_ref, state_ref, acts_ref,
                  w1_ref, b1_ref, w2s_ref, b2_ref,
                  wi_ref, bi_ref, wa_ref, ba_ref,
                  wih_s_ref, wih_a0_ref, wih_i_ref, wih_a_ref, wih_att_ref,
                  whh_ref, blstm_ref,
                  wf1_ref, bf1_ref, wf2_ref, bf2_ref,
                  out_ref,
                  *, seq, batch, hidden, ow1, kh2, kw2):
    f32 = jnp.float32

    # ---- conv1: im2col patches @ W1 + b1, ReLU ------------------------------
    c1 = jnp.maximum(
        jnp.dot(p1_ref[...], w1_ref[...], preferred_element_type=f32) + b1_ref[...],
        0.0)                                              # [P1, C1]

    # ---- conv2 (1x1 spatial output): tap-wise accumulated matmuls -----------
    acc = b2_ref[...]                                     # [1, O2]
    for kh in range(kh2):
        for kw in range(kw2):
            row = kh * ow1 + kw                           # conv1 output position used
            tap = w2s_ref[kh * kw2 + kw]                  # [C1, O2]
            acc = acc + jnp.dot(c1[row:row + 1, :], tap, preferred_element_type=f32)
    c2 = jnp.maximum(acc, 0.0)                            # [1, O2] == flattened conv out

    # ---- init / att FC projections (Linear + ReLU) ---------------------------
    init_fc = jnp.maximum(
        jnp.dot(c2, wi_ref[...], preferred_element_type=f32) + bi_ref[...], 0.0)   # [1, H-A-S]
    att_fc = jnp.maximum(
        jnp.dot(c2, wa_ref[...], preferred_element_type=f32) + ba_ref[...], 0.0)   # [1, H-A]

    # ---- precompute input-side gate contributions (hoisted out of recurrence)
    bias = blstm_ref[...]                                 # [1, 4H]
    state = state_ref[...]                                # [B, S]
    acts = acts_ref[...]                                  # [seq*B, A] (time-major)

    g0 = (_outer_accum(state, wih_s_ref[...])             # state part   (t = 0)
          + _outer_accum(acts[0:batch, :], wih_a0_ref[...])   # action part (t = 0)
          + jnp.dot(init_fc, wih_i_ref[...], preferred_element_type=f32)
          + bias)                                         # [B, 4H]
    g_att = jnp.dot(att_fc, wih_att_ref[...], preferred_element_type=f32) + bias   # [1, 4H]
    g_act = _outer_accum(acts, wih_a_ref[...])            # [seq*B, 4H] (rows 0:B unused)

    whh = whh_ref[...]
    wf1 = wf1_ref[...]
    bf1 = bf1_ref[...]
    wf2 = wf2_ref[...]
    bf2 = bf2_ref[...]

    H = hidden
    h = None
    c = None
    # Statically unrolled recurrence; only h @ Whh is on the serial chain.
    for t in range(seq):
        if t == 0:
            gates = g0                                    # h0 = c0 = 0
        else:
            gates = (g_act[t * batch:(t + 1) * batch, :] + g_att
                     + jnp.dot(h, whh, preferred_element_type=f32))
        i_g = jax.nn.sigmoid(gates[:, 0 * H:1 * H])
        f_g = jax.nn.sigmoid(gates[:, 1 * H:2 * H])
        g_g = jnp.tanh(gates[:, 2 * H:3 * H])
        o_g = jax.nn.sigmoid(gates[:, 3 * H:4 * H])
        c = i_g * g_g if t == 0 else f_g * c + i_g * g_g
        h = o_g * jnp.tanh(c)

        # auc_output_fc: Linear -> ReLU -> Linear, then tanh (+ 2*t for t >= 1)
        fc1 = jnp.maximum(jnp.dot(h, wf1, preferred_element_type=f32) + bf1, 0.0)
        fc2 = jnp.dot(fc1, wf2, preferred_element_type=f32) + bf2
        out_ref[t] = jnp.tanh(fc2) + 2.0 * t


# ----------------------------------------------------------------------------
# Host glue
# ----------------------------------------------------------------------------
def im2col_chw(x, kh, kw, sh, sw):
    """x: [C, H, W] -> patches [oh*ow, C*kh*kw] ((c, kh, kw) column order)."""
    c, h, w = x.shape
    oh = (h - kh) // sh + 1
    ow = (w - kw) // sw + 1
    hi = np.arange(oh)[:, None, None, None] * sh + np.arange(kh)[None, None, :, None]
    wi = np.arange(ow)[None, :, None, None] * sw + np.arange(kw)[None, None, None, :]
    hi = np.broadcast_to(hi, (oh, ow, kh, kw))
    wi = np.broadcast_to(wi, (oh, ow, kh, kw))
    patches = x[:, hi, wi]                                    # [c, oh, ow, kh, kw] (1 gather)
    patches = jnp.transpose(patches, (1, 2, 0, 3, 4)).reshape(oh * ow, c * kh * kw)
    return patches, oh, ow


def prepare_params(params, *, state_dim, action_dim):
    """One-time weight rearrangement (transposes, conv2 tap layout, bias fuse)."""
    f32 = jnp.float32
    o1 = params['conv1_w'].shape[0]
    o2, c1, kh2, kw2 = params['conv2_w'].shape
    wih_t = params['lstm_w_ih'].T.astype(f32)                 # [D_in, 4H]
    s, a = state_dim, action_dim
    return {
        'w1': params['conv1_w'].reshape(o1, -1).T.astype(f32),            # [C*kh*kw, O1]
        'b1': params['conv1_b'].reshape(1, -1).astype(f32),
        'w2s': jnp.transpose(params['conv2_w'], (2, 3, 1, 0))
                  .reshape(kh2 * kw2, c1, o2).astype(f32),                # [taps, C1, O2]
        'b2': params['conv2_b'].reshape(1, -1).astype(f32),
        'wi': params['init_fc_w'].T.astype(f32),
        'bi': params['init_fc_b'].reshape(1, -1).astype(f32),
        'wa': params['att_fc_w'].T.astype(f32),
        'ba': params['att_fc_b'].reshape(1, -1).astype(f32),
        'wih_s': wih_t[:s],                                   # t=0: state rows
        'wih_a0': wih_t[s:s + a],                             # t=0: action rows
        'wih_i': wih_t[s + a:],                               # t=0: init-fc rows
        'wih_a': wih_t[:a],                                   # t>=1: action rows
        'wih_att': wih_t[a:],                                 # t>=1: att-fc rows
        'whh': params['lstm_w_hh'].T.astype(f32),
        'blstm': (params['lstm_b_ih'] + params['lstm_b_hh']).reshape(1, -1).astype(f32),
        'wf1': params['out_fc1_w'].T.astype(f32),
        'bf1': params['out_fc1_b'].reshape(1, -1).astype(f32),
        'wf2': params['out_fc2_w'].T.astype(f32),
        'bf2': params['out_fc2_b'].reshape(1, -1).astype(f32),
    }


def auc_lstm_forward(prepped, state, action_predictions, images,
                     *, hidden, state_dim, action_dim, conv_cfg):
    """Inference forward: returns stacked outputs [seq, batch, out_dim]."""
    (kh1, kw1, sh1, sw1), (kh2, kw2, sh2, sw2) = conv_cfg
    batch, seq = action_predictions.shape[0], action_predictions.shape[1]
    out_dim = prepped['wf2'].shape[1]

    p1, oh1, ow1 = im2col_chw(images.astype(jnp.float32), kh1, kw1, sh1, sw1)
    oh2 = (oh1 - kh2) // sh2 + 1
    ow2 = (ow1 - kw2) // sw2 + 1
    # TODO(synk): fused kernel implements the 1x1 conv2 spatial output produced
    # by the module's conv config on a 16x16 grid; larger grids (oh2*ow2 > 1)
    # would need the PyTorch (c, h, w) flatten-order handling.
    assert oh2 == 1 and ow2 == 1, "fused kernel assumes conv2 spatial output of 1x1"

    # actions -> time-major flat [seq*batch, A]
    acts_flat = jnp.transpose(action_predictions.astype(jnp.float32),
                              (1, 0, 2)).reshape(seq * batch, -1)

    kernel = functools.partial(_fused_kernel, seq=seq, batch=batch, hidden=hidden,
                               ow1=ow1, kh2=kh2, kw2=kw2)
    out = pl.pallas_call(
        kernel,
        out_shape=jax.ShapeDtypeStruct((seq, batch, out_dim), jnp.float32),
    )(p1, state.astype(jnp.float32), acts_flat,
      prepped['w1'], prepped['b1'], prepped['w2s'], prepped['b2'],
      prepped['wi'], prepped['bi'], prepped['wa'], prepped['ba'],
      prepped['wih_s'], prepped['wih_a0'], prepped['wih_i'],
      prepped['wih_a'], prepped['wih_att'],
      prepped['whh'], prepped['blstm'],
      prepped['wf1'], prepped['bf1'], prepped['wf2'], prepped['bf2'])
    return out


# ----------------------------------------------------------------------------
# Pure-JAX reference (for correctness check)
# ----------------------------------------------------------------------------
def reference_forward(params, state, action_predictions, images, hidden):
    batch = state.shape[0]
    seq = action_predictions.shape[1]
    img = images[None]
    c1 = jax.lax.conv_general_dilated(img, params['conv1_w'], (3, 3), 'VALID',
                                      dimension_numbers=('NCHW', 'OIHW', 'NCHW'))
    c1 = jnp.maximum(c1 + params['conv1_b'].reshape(1, -1, 1, 1), 0.0)
    c2 = jax.lax.conv_general_dilated(c1, params['conv2_w'], (3, 3), 'VALID',
                                      dimension_numbers=('NCHW', 'OIHW', 'NCHW'))
    c2 = jnp.maximum(c2 + params['conv2_b'].reshape(1, -1, 1, 1), 0.0)
    conv_flat = c2.reshape(1, -1)

    init_fc = jnp.maximum(conv_flat @ params['init_fc_w'].T + params['init_fc_b'], 0.0)
    att_fc = jnp.maximum(conv_flat @ params['att_fc_w'].T + params['att_fc_b'], 0.0)

    h = jnp.zeros((batch, hidden), jnp.float32)
    c = jnp.zeros((batch, hidden), jnp.float32)
    outs = []
    for t in range(seq):
        if t == 0:
            x = jnp.concatenate([state, action_predictions[:, 0, :],
                                 jnp.tile(init_fc, (batch, 1))], axis=1)
        else:
            x = jnp.concatenate([action_predictions[:, t, :],
                                 jnp.tile(att_fc, (batch, 1))], axis=1)
        gates = (x @ params['lstm_w_ih'].T + h @ params['lstm_w_hh'].T
                 + params['lstm_b_ih'] + params['lstm_b_hh'])
        i_g = jax.nn.sigmoid(gates[:, 0 * hidden:1 * hidden])
        f_g = jax.nn.sigmoid(gates[:, 1 * hidden:2 * hidden])
        g_g = jnp.tanh(gates[:, 2 * hidden:3 * hidden])
        o_g = jax.nn.sigmoid(gates[:, 3 * hidden:4 * hidden])
        c = f_g * c + i_g * g_g
        h = o_g * jnp.tanh(c)
        fc1 = jnp.maximum(h @ params['out_fc1_w'].T + params['out_fc1_b'], 0.0)
        fc2 = fc1 @ params['out_fc2_w'].T + params['out_fc2_b']
        outs.append(jnp.tanh(fc2) + 2.0 * t)
    return outs


# ----------------------------------------------------------------------------
if __name__ == "__main__":
    GRID_H, GRID_W = 16, 16
    STATE_DIM, ACTION_DIM = 4, 2
    SEQ = 8
    HIDDEN = 32                        # lstm_hidden_size
    FC_HIDDEN = 16                     # auclstm_out_fc_hidden_size
    OUT_DIM = 8                        # auclstm_output_dim
    BATCH = 2
    LSTM_IN = HIDDEN + ACTION_DIM      # 34
    assert LSTM_IN - ACTION_DIM - STATE_DIM > 0
    CONV_OUT = 16                      # conv stack output for 16x16 input (1x1x16)
    CONV_CFG = ((3, 5, 3, 3), (3, 3, 3, 3))   # (kh, kw, sh, sw) for conv1, conv2

    key = jax.random.PRNGKey(0)
    ks = jax.random.split(key, 20)
    f32 = jnp.float32
    params = {
        'conv1_w': 0.10 * jax.random.normal(ks[0], (64, 4, 3, 5), f32),
        'conv1_b': 0.05 * jax.random.normal(ks[1], (64,), f32),
        'conv2_w': 0.10 * jax.random.normal(ks[2], (16, 64, 3, 3), f32),
        'conv2_b': 0.05 * jax.random.normal(ks[3], (16,), f32),
        'init_fc_w': 0.10 * jax.random.normal(ks[4], (LSTM_IN - ACTION_DIM - STATE_DIM, CONV_OUT), f32),
        'init_fc_b': 0.05 * jax.random.normal(ks[5], (LSTM_IN - ACTION_DIM - STATE_DIM,), f32),
        'att_fc_w': 0.10 * jax.random.normal(ks[6], (LSTM_IN - ACTION_DIM, CONV_OUT), f32),
        'att_fc_b': 0.05 * jax.random.normal(ks[7], (LSTM_IN - ACTION_DIM,), f32),
        'lstm_w_ih': 0.10 * jax.random.normal(ks[8], (4 * HIDDEN, LSTM_IN), f32),
        'lstm_w_hh': 0.10 * jax.random.normal(ks[9], (4 * HIDDEN, HIDDEN), f32),
        'lstm_b_ih': 0.05 * jax.random.normal(ks[10], (4 * HIDDEN,), f32),
        'lstm_b_hh': 0.05 * jax.random.normal(ks[11], (4 * HIDDEN,), f32),
        'out_fc1_w': 0.10 * jax.random.normal(ks[12], (FC_HIDDEN, HIDDEN), f32),
        'out_fc1_b': 0.05 * jax.random.normal(ks[13], (FC_HIDDEN,), f32),
        'out_fc2_w': 0.10 * jax.random.normal(ks[14], (OUT_DIM, FC_HIDDEN), f32),
        'out_fc2_b': 0.05 * jax.random.normal(ks[15], (OUT_DIM,), f32),
    }

    state = jax.random.normal(ks[16], (BATCH, STATE_DIM), f32)
    action_predictions = jax.random.normal(ks[17], (BATCH, SEQ, ACTION_DIM), f32)
    images = jax.random.normal(ks[18], (4, GRID_H, GRID_W), f32)   # inference: single image

    prepped = prepare_params(params, state_dim=STATE_DIM, action_dim=ACTION_DIM)
    fwd = jax.jit(functools.partial(auc_lstm_forward,
                                    hidden=HIDDEN, state_dim=STATE_DIM,
                                    action_dim=ACTION_DIM, conv_cfg=CONV_CFG))

    out = jax.block_until_ready(fwd(prepped, state, action_predictions, images))
    hidden_outputs = [out[t] for t in range(SEQ)]           # list of [batch, out_dim], like PyTorch

    ref_outputs = reference_forward(params, state, action_predictions, images, HIDDEN)
    for got, want in zip(hidden_outputs, ref_outputs):
        assert got.shape == (BATCH, OUT_DIM)
        assert jnp.allclose(got, want, rtol=1e-3, atol=2e-3), \
            f"mismatch: max abs err {jnp.max(jnp.abs(got - want))}"

    print("KERNEL_OK")
</pallas_src>

<mosaic_0001>
module attributes {stable_mosaic.version = 11 : i64} {
  func.func @_fused_kernel(%arg0: memref<20x60xf32, #tpu.memory_space<vmem>>, %arg1: memref<2x4xf32, #tpu.memory_space<vmem>>, %arg2: memref<16x2xf32, #tpu.memory_space<vmem>>, %arg3: memref<60x64xf32, #tpu.memory_space<vmem>>, %arg4: memref<1x64xf32, #tpu.memory_space<vmem>>, %arg5: memref<9x64x16xf32, #tpu.memory_space<vmem>>, %arg6: memref<1x16xf32, #tpu.memory_space<vmem>>, %arg7: memref<16x28xf32, #tpu.memory_space<vmem>>, %arg8: memref<1x28xf32, #tpu.memory_space<vmem>>, %arg9: memref<16x32xf32, #tpu.memory_space<vmem>>, %arg10: memref<1x32xf32, #tpu.memory_space<vmem>>, %arg11: memref<4x128xf32, #tpu.memory_space<vmem>>, %arg12: memref<2x128xf32, #tpu.memory_space<vmem>>, %arg13: memref<28x128xf32, #tpu.memory_space<vmem>>, %arg14: memref<2x128xf32, #tpu.memory_space<vmem>>, %arg15: memref<32x128xf32, #tpu.memory_space<vmem>>, %arg16: memref<32x128xf32, #tpu.memory_space<vmem>>, %arg17: memref<1x128xf32, #tpu.memory_space<vmem>>, %arg18: memref<32x16xf32, #tpu.memory_space<vmem>>, %arg19: memref<1x16xf32, #tpu.memory_space<vmem>>, %arg20: memref<16x8xf32, #tpu.memory_space<vmem>>, %arg21: memref<1x8xf32, #tpu.memory_space<vmem>>, %arg22: memref<8x2x8xf32, #tpu.memory_space<vmem>>) attributes {dimension_semantics = [], scalar_prefetch = 0 : i64, scratch_operands = 0 : i64, tpu.core_type = #tpu.core_type<tc>} {
    %c0 = arith.constant 0 : index
    %c0_0 = arith.constant 0 : index
    %0 = vector.load %arg0[%c0, %c0_0] : memref<20x60xf32, #tpu.memory_space<vmem>>, vector<20x60xf32>
    %c0_1 = arith.constant 0 : index
    %c0_2 = arith.constant 0 : index
    %1 = vector.load %arg3[%c0_1, %c0_2] : memref<60x64xf32, #tpu.memory_space<vmem>>, vector<60x64xf32>
    %cst = arith.constant dense<0.000000e+00> : vector<20x64xf32>
    %2 = tpu.matmul %0, %1, %cst {dimension_numbers = #tpu.dot_dimension_numbers<[1], [0], [0], [1], [0, 0, 1, 1], [], []>} : vector<20x60xf32>, vector<60x64xf32>, vector<20x64xf32> -> vector<20x64xf32>
    %c0_3 = arith.constant 0 : index
    %c0_4 = arith.constant 0 : index
    %3 = vector.load %arg4[%c0_3, %c0_4] : memref<1x64xf32, #tpu.memory_space<vmem>>, vector<1x64xf32>
    %4 = vector.broadcast %3 : vector<1x64xf32> to vector<20x64xf32>
    %5 = arith.addf %2, %4 : vector<20x64xf32>
    %cst_5 = arith.constant 0.000000e+00 : f32
    %6 = vector.broadcast %cst_5 : f32 to vector<20x64xf32>
    %7 = arith.maximumf %5, %6 : vector<20x64xf32>
    %c0_6 = arith.constant 0 : index
    %c0_7 = arith.constant 0 : index
    %8 = vector.load %arg6[%c0_6, %c0_7] : memref<1x16xf32, #tpu.memory_space<vmem>>, vector<1x16xf32>
    %c0_8 = arith.constant 0 : index
    %c0_9 = arith.constant 0 : index
    %c0_10 = arith.constant 0 : index
    %9 = vector.load %arg5[%c0_8, %c0_9, %c0_10] : memref<9x64x16xf32, #tpu.memory_space<vmem>>, vector<1x64x16xf32>
    %10 = vector.shape_cast %9 : vector<1x64x16xf32> to vector<64x16xf32>
    %11 = vector.extract_strided_slice %7 {offsets = [0, 0], sizes = [1, 64], strides = [1, 1]} : vector<20x64xf32> to vector<1x64xf32>
    %cst_11 = arith.constant dense<0.000000e+00> : vector<1x16xf32>
    %12 = tpu.matmul %11, %10, %cst_11 {dimension_numbers = #tpu.dot_dimension_numbers<[1], [0], [0], [1], [0, 0, 1, 1], [], []>} : vector<1x64xf32>, vector<64x16xf32>, vector<1x16xf32> -> vector<1x16xf32>
    %13 = arith.addf %8, %12 : vector<1x16xf32>
    %c1 = arith.constant 1 : index
    %c0_12 = arith.constant 0 : index
    %c0_13 = arith.constant 0 : index
    %14 = vector.load %arg5[%c1, %c0_12, %c0_13] : memref<9x64x16xf32, #tpu.memory_space<vmem>>, vector<1x64x16xf32>
    %15 = vector.shape_cast %14 : vector<1x64x16xf32> to vector<64x16xf32>
    %16 = vector.extract_strided_slice %7 {offsets = [1, 0], sizes = [1, 64], strides = [1, 1]} : vector<20x64xf32> to vector<1x64xf32>
    %cst_14 = arith.constant dense<0.000000e+00> : vector<1x16xf32>
    %17 = tpu.matmul %16, %15, %cst_14 {dimension_numbers = #tpu.dot_dimension_numbers<[1], [0], [0], [1], [0, 0, 1, 1], [], []>} : vector<1x64xf32>, vector<64x16xf32>, vector<1x16xf32> -> vector<1x16xf32>
    %18 = arith.addf %13, %17 : vector<1x16xf32>
    %c2 = arith.constant 2 : index
    %c0_15 = arith.constant 0 : index
    %c0_16 = arith.constant 0 : index
    %19 = vector.load %arg5[%c2, %c0_15, %c0_16] : memref<9x64x16xf32, #tpu.memory_space<vmem>>, vector<1x64x16xf32>
    %20 = vector.shape_cast %19 : vector<1x64x16xf32> to vector<64x16xf32>
    %21 = vector.extract_strided_slice %7 {offsets = [2, 0], sizes = [1, 64], strides = [1, 1]} : vector<20x64xf32> to vector<1x64xf32>
    %cst_17 = arith.constant dense<0.000000e+00> : vector<1x16xf32>
    %22 = tpu.matmul %21, %20, %cst_17 {dimension_numbers = #tpu.dot_dimension_numbers<[1], [0], [0], [1], [0, 0, 1, 1], [], []>} : vector<1x64xf32>, vector<64x16xf32>, vector<1x16xf32> -> vector<1x16xf32>
    %23 = arith.addf %18, %22 : vector<1x16xf32>
    %c3 = arith.constant 3 : index
    %c0_18 = arith.constant 0 : index
    %c0_19 = arith.constant 0 : index
    %24 = vector.load %arg5[%c3, %c0_18, %c0_19] : memref<9x64x16xf32, #tpu.memory_space<vmem>>, vector<1x64x16xf32>
    %25 = vector.shape_cast %24 : vector<1x64x16xf32> to vector<64x16xf32>
    %26 = vector.extract_strided_slice %7 {offsets = [4, 0], sizes = [1, 64], strides = [1, 1]} : vector<20x64xf32> to vector<1x64xf32>
    %cst_20 = arith.constant dense<0.000000e+00> : vector<1x16xf32>
    %27 = tpu.matmul %26, %25, %cst_20 {dimension_numbers = #tpu.dot_dimension_numbers<[1], [0], [0], [1], [0, 0, 1, 1], [], []>} : vector<1x64xf32>, vector<64x16xf32>, vector<1x16xf32> -> vector<1x16xf32>
    %28 = arith.addf %23, %27 : vector<1x16xf32>
    %c4 = arith.constant 4 : index
    %c0_21 = arith.constant 0 : index
    %c0_22 = arith.constant 0 : index
    %29 = vector.load %arg5[%c4, %c0_21, %c0_22] : memref<9x64x16xf32, #tpu.memory_space<vmem>>, vector<1x64x16xf32>
    %30 = vector.shape_cast %29 : vector<1x64x16xf32> to vector<64x16xf32>
    %31 = vector.extract_strided_slice %7 {offsets = [5, 0], sizes = [1, 64], strides = [1, 1]} : vector<20x64xf32> to vector<1x64xf32>
    %cst_23 = arith.constant dense<0.000000e+00> : vector<1x16xf32>
    %32 = tpu.matmul %31, %30, %cst_23 {dimension_numbers = #tpu.dot_dimension_numbers<[1], [0], [0], [1], [0, 0, 1, 1], [], []>} : vector<1x64xf32>, vector<64x16xf32>, vector<1x16xf32> -> vector<1x16xf32>
    %33 = arith.addf %28, %32 : vector<1x16xf32>
    %c5 = arith.constant 5 : index
    %c0_24 = arith.constant 0 : index
    %c0_25 = arith.constant 0 : index
    %34 = vector.load %arg5[%c5, %c0_24, %c0_25] : memref<9x64x16xf32, #tpu.memory_space<vmem>>, vector<1x64x16xf32>
    %35 = vector.shape_cast %34 : vector<1x64x16xf32> to vector<64x16xf32>
    %36 = vector.extract_strided_slice %7 {offsets = [6, 0], sizes = [1, 64], strides = [1, 1]} : vector<20x64xf32> to vector<1x64xf32>
    %cst_26 = arith.constant dense<0.000000e+00> : vector<1x16xf32>
    %37 = tpu.matmul %36, %35, %cst_26 {dimension_numbers = #tpu.dot_dimension_numbers<[1], [0], [0], [1], [0, 0, 1, 1], [], []>} : vector<1x64xf32>, vector<64x16xf32>, vector<1x16xf32> -> vector<1x16xf32>
    %38 = arith.addf %33, %37 : vector<1x16xf32>
    %c6 = arith.constant 6 : index
    %c0_27 = arith.constant 0 : index
    %c0_28 = arith.constant 0 : index
    %39 = vector.load %arg5[%c6, %c0_27, %c0_28] : memref<9x64x16xf32, #tpu.memory_space<vmem>>, vector<1x64x16xf32>
    %40 = vector.shape_cast %39 : vector<1x64x16xf32> to vector<64x16xf32>
    %41 = vector.extract_strided_slice %7 {offsets = [8, 0], sizes = [1, 64], strides = [1, 1]} : vector<20x64xf32> to vector<1x64xf32>
    %cst_29 = arith.constant dense<0.000000e+00> : vector<1x16xf32>
    %42 = tpu.matmul %41, %40, %cst_29 {dimension_numbers = #tpu.dot_dimension_numbers<[1], [0], [0], [1], [0, 0, 1, 1], [], []>} : vector<1x64xf32>, vector<64x16xf32>, vector<1x16xf32> -> vector<1x16xf32>
    %43 = arith.addf %38, %42 : vector<1x16xf32>
    %c7 = arith.constant 7 : index
    %c0_30 = arith.constant 0 : index
    %c0_31 = arith.constant 0 : index
    %44 = vector.load %arg5[%c7, %c0_30, %c0_31] : memref<9x64x16xf32, #tpu.memory_space<vmem>>, vector<1x64x16xf32>
    %45 = vector.shape_cast %44 : vector<1x64x16xf32> to vector<64x16xf32>
    %46 = vector.extract_strided_slice %7 {offsets = [9, 0], sizes = [1, 64], strides = [1, 1]} : vector<20x64xf32> to vector<1x64xf32>
    %cst_32 = arith.constant dense<0.000000e+00> : vector<1x16xf32>
    %47 = tpu.matmul %46, %45, %cst_32 {dimension_numbers = #tpu.dot_dimension_numbers<[1], [0], [0], [1], [0, 0, 1, 1], [], []>} : vector<1x64xf32>, vector<64x16xf32>, vector<1x16xf32> -> vector<1x16xf32>
    %48 = arith.addf %43, %47 : vector<1x16xf32>
    %c8 = arith.constant 8 : index
    %c0_33 = arith.constant 0 : index
    %c0_34 = arith.constant 0 : index
    %49 = vector.load %arg5[%c8, %c0_33, %c0_34] : memref<9x64x16xf32, #tpu.memory_space<vmem>>, vector<1x64x16xf32>
    %50 = vector.shape_cast %49 : vector<1x64x16xf32> to vector<64x16xf32>
    %51 = vector.extract_strided_slice %7 {offsets = [10, 0], sizes = [1, 64], strides = [1, 1]} : vector<20x64xf32> to vector<1x64xf32>
    %cst_35 = arith.constant dense<0.000000e+00> : vector<1x16xf32>
    %52 = tpu.matmul %51, %50, %cst_35 {dimension_numbers = #tpu.dot_dimension_numbers<[1], [0], [0], [1], [0, 0, 1, 1], [], []>} : vector<1x64xf32>, vector<64x16xf32>, vector<1x16xf32> -> vector<1x16xf32>
    %53 = arith.addf %48, %52 : vector<1x16xf32>
    %cst_36 = arith.constant 0.000000e+00 : f32
    %54 = vector.broadcast %cst_36 : f32 to vector<1x16xf32>
    %55 = arith.maximumf %53, %54 : vector<1x16xf32>
    %c0_37 = arith.constant 0 : index
    %c0_38 = arith.constant 0 : index
    %56 = vector.load %arg7[%c0_37, %c0_38] : memref<16x28xf32, #tpu.memory_space<vmem>>, vector<16x28xf32>
    %cst_39 = arith.constant dense<0.000000e+00> : vector<1x28xf32>
    %57 = tpu.matmul %55, %56, %cst_39 {dimension_numbers = #tpu.dot_dimension_numbers<[1], [0], [0], [1], [0, 0, 1, 1], [], []>} : vector<1x16xf32>, vector<16x28xf32>, vector<1x28xf32> -> vector<1x28xf32>
    %c0_40 = arith.constant 0 : index
    %c0_41 = arith.constant 0 : index
    %58 = vector.load %arg8[%c0_40, %c0_41] : memref<1x28xf32, #tpu.memory_space<vmem>>, vector<1x28xf32>
    %59 = arith.addf %57, %58 : vector<1x28xf32>
    %cst_42 = arith.constant 0.000000e+00 : f32
    %60 = vector.broadcast %cst_42 : f32 to vector<1x28xf32>
    %61 = arith.maximumf %59, %60 : vector<1x28xf32>
    %c0_43 = arith.constant 0 : index
    %c0_44 = arith.constant 0 : index
    %62 = vector.load %arg9[%c0_43, %c0_44] : memref<16x32xf32, #tpu.memory_space<vmem>>, vector<16x32xf32>
    %cst_45 = arith.constant dense<0.000000e+00> : vector<1x32xf32>
    %63 = tpu.matmul %55, %62, %cst_45 {dimension_numbers = #tpu.dot_dimension_numbers<[1], [0], [0], [1], [0, 0, 1, 1], [], []>} : vector<1x16xf32>, vector<16x32xf32>, vector<1x32xf32> -> vector<1x32xf32>
    %c0_46 = arith.constant 0 : index
    %c0_47 = arith.constant 0 : index
    %64 = vector.load %arg10[%c0_46, %c0_47] : memref<1x32xf32, #tpu.memory_space<vmem>>, vector<1x32xf32>
    %65 = arith.addf %63, %64 : vector<1x32xf32>
    %cst_48 = arith.constant 0.000000e+00 : f32
    %66 = vector.broadcast %cst_48 : f32 to vector<1x32xf32>
    %67 = arith.maximumf %65, %66 : vector<1x32xf32>
    %c0_49 = arith.constant 0 : index
    %c0_50 = arith.constant 0 : index
    %68 = vector.load %arg17[%c0_49, %c0_50] : memref<1x128xf32, #tpu.memory_space<vmem>>, vector<1x128xf32>
    %c0_51 = arith.constant 0 : index
    %c0_52 = arith.constant 0 : index
    %69 = vector.load %arg1[%c0_51, %c0_52] : memref<2x4xf32, #tpu.memory_space<vmem>>, vector<2x4xf32>
    %c0_53 = arith.constant 0 : index
    %c0_54 = arith.constant 0 : index
    %70 = vector.load %arg2[%c0_53, %c0_54] : memref<16x2xf32, #tpu.memory_space<vmem>>, vector<16x2xf32>
    %c0_55 = arith.constant 0 : index
    %c0_56 = arith.constant 0 : index
    %71 = vector.load %arg11[%c0_55, %c0_56] : memref<4x128xf32, #tpu.memory_space<vmem>>, vector<4x128xf32>
    %72 = vector.extract_strided_slice %69 {offsets = [0, 0], sizes = [2, 1], strides = [1, 1]} : vector<2x4xf32> to vector<2x1xf32>
    %73 = vector.extract_strided_slice %71 {offsets = [0, 0], sizes = [1, 128], strides = [1, 1]} : vector<4x128xf32> to vector<1x128xf32>
    %74 = vector.broadcast %72 : vector<2x1xf32> to vector<2x128xf32>
    %75 = vector.broadcast %73 : vector<1x128xf32> to vector<2x128xf32>
    %76 = arith.mulf %74, %75 : vector<2x128xf32>
    %77 = vector.extract_strided_slice %69 {offsets = [0, 1], sizes = [2, 1], strides = [1, 1]} : vector<2x4xf32> to vector<2x1xf32>
    %78 = vector.extract_strided_slice %71 {offsets = [1, 0], sizes = [1, 128], strides = [1, 1]} : vector<4x128xf32> to vector<1x128xf32>
    %79 = vector.broadcast %77 : vector<2x1xf32> to vector<2x128xf32>
    %80 = vector.broadcast %78 : vector<1x128xf32> to vector<2x128xf32>
    %81 = arith.mulf %79, %80 : vector<2x128xf32>
    %82 = arith.addf %76, %81 : vector<2x128xf32>
    %83 = vector.extract_strided_slice %69 {offsets = [0, 2], sizes = [2, 1], strides = [1, 1]} : vector<2x4xf32> to vector<2x1xf32>
    %84 = vector.extract_strided_slice %71 {offsets = [2, 0], sizes = [1, 128], strides = [1, 1]} : vector<4x128xf32> to vector<1x128xf32>
    %85 = vector.broadcast %83 : vector<2x1xf32> to vector<2x128xf32>
    %86 = vector.broadcast %84 : vector<1x128xf32> to vector<2x128xf32>
    %87 = arith.mulf %85, %86 : vector<2x128xf32>
    %88 = arith.addf %82, %87 : vector<2x128xf32>
    %89 = vector.extract_strided_slice %69 {offsets = [0, 3], sizes = [2, 1], strides = [1, 1]} : vector<2x4xf32> to vector<2x1xf32>
    %90 = vector.extract_strided_slice %71 {offsets = [3, 0], sizes = [1, 128], strides = [1, 1]} : vector<4x128xf32> to vector<1x128xf32>
    %91 = vector.broadcast %89 : vector<2x1xf32> to vector<2x128xf32>
    %92 = vector.broadcast %90 : vector<1x128xf32> to vector<2x128xf32>
    %93 = arith.mulf %91, %92 : vector<2x128xf32>
    %94 = arith.addf %88, %93 : vector<2x128xf32>
    %95 = vector.extract_strided_slice %70 {offsets = [0, 0], sizes = [2, 2], strides = [1, 1]} : vector<16x2xf32> to vector<2x2xf32>
    %c0_57 = arith.constant 0 : index
    %c0_58 = arith.constant 0 : index
    %96 = vector.load %arg12[%c0_57, %c0_58] : memref<2x128xf32, #tpu.memory_space<vmem>>, vector<2x128xf32>
    %97 = vector.extract_strided_slice %95 {offsets = [0, 0], sizes = [2, 1], strides = [1, 1]} : vector<2x2xf32> to vector<2x1xf32>
    %98 = vector.extract_strided_slice %96 {offsets = [0, 0], sizes = [1, 128], strides = [1, 1]} : vector<2x128xf32> to vector<1x128xf32>
    %99 = vector.broadcast %97 : vector<2x1xf32> to vector<2x128xf32>
    %100 = vector.broadcast %98 : vector<1x128xf32> to vector<2x128xf32>
    %101 = arith.mulf %99, %100 : vector<2x128xf32>
    %102 = vector.extract_strided_slice %95 {offsets = [0, 1], sizes = [2, 1], strides = [1, 1]} : vector<2x2xf32> to vector<2x1xf32>
    %103 = vector.extract_strided_slice %96 {offsets = [1, 0], sizes = [1, 128], strides = [1, 1]} : vector<2x128xf32> to vector<1x128xf32>
    %104 = vector.broadcast %102 : vector<2x1xf32> to vector<2x128xf32>
    %105 = vector.broadcast %103 : vector<1x128xf32> to vector<2x128xf32>
    %106 = arith.mulf %104, %105 : vector<2x128xf32>
    %107 = arith.addf %101, %106 : vector<2x128xf32>
    %108 = arith.addf %94, %107 : vector<2x128xf32>
    %c0_59 = arith.constant 0 : index
    %c0_60 = arith.constant 0 : index
    %109 = vector.load %arg13[%c0_59, %c0_60] : memref<28x128xf32, #tpu.memory_space<vmem>>, vector<28x128xf32>
    %cst_61 = arith.constant dense<0.000000e+00> : vector<1x128xf32>
    %110 = tpu.matmul %61, %109, %cst_61 {dimension_numbers = #tpu.dot_dimension_numbers<[1], [0], [0], [1], [0, 0, 1, 1], [], []>} : vector<1x28xf32>, vector<28x128xf32>, vector<1x128xf32> -> vector<1x128xf32>
    %111 = vector.broadcast %110 : vector<1x128xf32> to vector<2x128xf32>
    %112 = arith.addf %108, %111 : vector<2x128xf32>
    %113 = vector.broadcast %68 : vector<1x128xf32> to vector<2x128xf32>
    %114 = arith.addf %112, %113 : vector<2x128xf32>
    %c0_62 = arith.constant 0 : index
    %c0_63 = arith.constant 0 : index
    %115 = vector.load %arg15[%c0_62, %c0_63] : memref<32x128xf32, #tpu.memory_space<vmem>>, vector<32x128xf32>
    %cst_64 = arith.constant dense<0.000000e+00> : vector<1x128xf32>
    %116 = tpu.matmul %67, %115, %cst_64 {dimension_numbers = #tpu.dot_dimension_numbers<[1], [0], [0], [1], [0, 0, 1, 1], [], []>} : vector<1x32xf32>, vector<32x128xf32>, vector<1x128xf32> -> vector<1x128xf32>
    %117 = arith.addf %116, %68 : vector<1x128xf32>
    %c0_65 = arith.constant 0 : index
    %c0_66 = arith.constant 0 : index
    %118 = vector.load %arg14[%c0_65, %c0_66] : memref<2x128xf32, #tpu.memory_space<vmem>>, vector<2x128xf32>
    %119 = vector.extract_strided_slice %70 {offsets = [0, 0], sizes = [16, 1], strides = [1, 1]} : vector<16x2xf32> to vector<16x1xf32>
    %120 = vector.extract_strided_slice %118 {offsets = [0, 0], sizes = [1, 128], strides = [1, 1]} : vector<2x128xf32> to vector<1x128xf32>
    %121 = vector.broadcast %119 : vector<16x1xf32> to vector<16x128xf32>
    %122 = vector.broadcast %120 : vector<1x128xf32> to vector<16x128xf32>
    %123 = arith.mulf %121, %122 : vector<16x128xf32>
    %124 = vector.extract_strided_slice %70 {offsets = [0, 1], sizes = [16, 1], strides = [1, 1]} : vector<16x2xf32> to vector<16x1xf32>
    %125 = vector.extract_strided_slice %118 {offsets = [1, 0], sizes = [1, 128], strides = [1, 1]} : vector<2x128xf32> to vector<1x128xf32>
    %126 = vector.broadcast %124 : vector<16x1xf32> to vector<16x128xf32>
    %127 = vector.broadcast %125 : vector<1x128xf32> to vector<16x128xf32>
    %128 = arith.mulf %126, %127 : vector<16x128xf32>
    %129 = arith.addf %123, %128 : vector<16x128xf32>
    %c0_67 = arith.constant 0 : index
    %c0_68 = arith.constant 0 : index
    %130 = vector.load %arg16[%c0_67, %c0_68] : memref<32x128xf32, #tpu.memory_space<vmem>>, vector<32x128xf32>
    %c0_69 = arith.constant 0 : index
    %c0_70 = arith.constant 0 : index
    %131 = vector.load %arg18[%c0_69, %c0_70] : memref<32x16xf32, #tpu.memory_space<vmem>>, vector<32x16xf32>
    %c0_71 = arith.constant 0 : index
    %c0_72 = arith.constant 0 : index
    %132 = vector.load %arg19[%c0_71, %c0_72] : memref<1x16xf32, #tpu.memory_space<vmem>>, vector<1x16xf32>
    %c0_73 = arith.constant 0 : index
    %c0_74 = arith.constant 0 : index
    %133 = vector.load %arg20[%c0_73, %c0_74] : memref<16x8xf32, #tpu.memory_space<vmem>>, vector<16x8xf32>
    %c0_75 = arith.constant 0 : index
    %c0_76 = arith.constant 0 : index
    %134 = vector.load %arg21[%c0_75, %c0_76] : memref<1x8xf32, #tpu.memory_space<vmem>>, vector<1x8xf32>
    %135 = vector.extract_strided_slice %114 {offsets = [0, 0], sizes = [2, 32], strides = [1, 1]} : vector<2x128xf32> to vector<2x32xf32>
    %136 = arith.negf %135 : vector<2x32xf32>
    %137 = math.exp %136 : vector<2x32xf32>
    %cst_77 = arith.constant 1.000000e+00 : f32
    %138 = vector.broadcast %cst_77 : f32 to vector<2x32xf32>
    %139 = arith.addf %138, %137 : vector<2x32xf32>
    %140 = arith.divf %138, %139 : vector<2x32xf32>
    %141 = vector.extract_strided_slice %114 {offsets = [0, 64], sizes = [2, 32], strides = [1, 1]} : vector<2x128xf32> to vector<2x32xf32>
    %142 = math.tanh %141 : vector<2x32xf32>
    %143 = vector.extract_strided_slice %114 {offsets = [0, 96], sizes = [2, 32], strides = [1, 1]} : vector<2x128xf32> to vector<2x32xf32>
    %144 = arith.negf %143 : vector<2x32xf32>
    %145 = math.exp %144 : vector<2x32xf32>
    %cst_78 = arith.constant 1.000000e+00 : f32
    %146 = vector.broadcast %cst_78 : f32 to vector<2x32xf32>
    %147 = arith.addf %146, %145 : vector<2x32xf32>
    %148 = arith.divf %146, %147 : vector<2x32xf32>
    %149 = arith.mulf %140, %142 : vector<2x32xf32>
    %150 = math.tanh %149 : vector<2x32xf32>
    %151 = arith.mulf %148, %150 : vector<2x32xf32>
    %cst_79 = arith.constant dense<0.000000e+00> : vector<2x16xf32>
    %152 = tpu.matmul %151, %131, %cst_79 {dimension_numbers = #tpu.dot_dimension_numbers<[1], [0], [0], [1], [0, 0, 1, 1], [], []>} : vector<2x32xf32>, vector<32x16xf32>, vector<2x16xf32> -> vector<2x16xf32>
    %153 = vector.broadcast %132 : vector<1x16xf32> to vector<2x16xf32>
    %154 = arith.addf %152, %153 : vector<2x16xf32>
    %cst_80 = arith.constant 0.000000e+00 : f32
    %155 = vector.broadcast %cst_80 : f32 to vector<2x16xf32>
    %156 = arith.maximumf %154, %155 : vector<2x16xf32>
    %cst_81 = arith.constant dense<0.000000e+00> : vector<2x8xf32>
    %157 = tpu.matmul %156, %133, %cst_81 {dimension_numbers = #tpu.dot_dimension_numbers<[1], [0], [0], [1], [0, 0, 1, 1], [], []>} : vector<2x16xf32>, vector<16x8xf32>, vector<2x8xf32> -> vector<2x8xf32>
    %158 = vector.broadcast %134 : vector<1x8xf32> to vector<2x8xf32>
    %159 = arith.addf %157, %158 : vector<2x8xf32>
    %160 = math.tanh %159 : vector<2x8xf32>
    %cst_82 = arith.constant 0.000000e+00 : f32
    %161 = vector.broadcast %cst_82 : f32 to vector<2x8xf32>
    %162 = arith.addf %160, %161 : vector<2x8xf32>
    %c0_83 = arith.constant 0 : index
    %c0_84 = arith.constant 0 : index
    %c0_85 = arith.constant 0 : index
    %163 = vector.load %arg22[%c0_83, %c0_84, %c0_85] : memref<8x2x8xf32, #tpu.memory_space<vmem>>, vector<1x2x8xf32>
    %164 = vector.shape_cast %163 : vector<1x2x8xf32> to vector<2x8xf32>
    %165 = vector.shape_cast %162 : vector<2x8xf32> to vector<1x2x8xf32>
    tpu.vector_store %arg22[%c0_83, %c0_84, %c0_85], %165 {strides = array<i32>} : memref<8x2x8xf32, #tpu.memory_space<vmem>>, vector<1x2x8xf32>,
    %166 = vector.extract_strided_slice %129 {offsets = [2, 0], sizes = [2, 128], strides = [1, 1]} : vector<16x128xf32> to vector<2x128xf32>
    %167 = vector.broadcast %117 : vector<1x128xf32> to vector<2x128xf32>
    %168 = arith.addf %166, %167 : vector<2x128xf32>
    %cst_86 = arith.constant dense<0.000000e+00> : vector<2x128xf32>
    %169 = tpu.matmul %151, %130, %cst_86 {dimension_numbers = #tpu.dot_dimension_numbers<[1], [0], [0], [1], [0, 0, 1, 1], [], []>} : vector<2x32xf32>, vector<32x128xf32>, vector<2x128xf32> -> vector<2x128xf32>
    %170 = arith.addf %168, %169 : vector<2x128xf32>
    %171 = vector.extract_strided_slice %170 {offsets = [0, 0], sizes = [2, 32], strides = [1, 1]} : vector<2x128xf32> to vector<2x32xf32>
    %172 = arith.negf %171 : vector<2x32xf32>
    %173 = math.exp %172 : vector<2x32xf32>
    %cst_87 = arith.constant 1.000000e+00 : f32
    %174 = vector.broadcast %cst_87 : f32 to vector<2x32xf32>
    %175 = arith.addf %174, %173 : vector<2x32xf32>
    %176 = arith.divf %174, %175 : vector<2x32xf32>
    %177 = vector.extract_strided_slice %170 {offsets = [0, 32], sizes = [2, 32], strides = [1, 1]} : vector<2x128xf32> to vector<2x32xf32>
    %178 = arith.negf %177 : vector<2x32xf32>
    %179 = math.exp %178 : vector<2x32xf32>
    %cst_88 = arith.constant 1.000000e+00 : f32
    %180 = vector.broadcast %cst_88 : f32 to vector<2x32xf32>
    %181 = arith.addf %180, %179 : vector<2x32xf32>
    %182 = arith.divf %180, %181 : vector<2x32xf32>
    %183 = vector.extract_strided_slice %170 {offsets = [0, 64], sizes = [2, 32], strides = [1, 1]} : vector<2x128xf32> to vector<2x32xf32>
    %184 = math.tanh %183 : vector<2x32xf32>
    %185 = vector.extract_strided_slice %170 {offsets = [0, 96], sizes = [2, 32], strides = [1, 1]} : vector<2x128xf32> to vector<2x32xf32>
    %186 = arith.negf %185 : vector<2x32xf32>
    %187 = math.exp %186 : vector<2x32xf32>
    %cst_89 = arith.constant 1.000000e+00 : f32
    %188 = vector.broadcast %cst_89 : f32 to vector<2x32xf32>
    %189 = arith.addf %188, %187 : vector<2x32xf32>
    %190 = arith.divf %188, %189 : vector<2x32xf32>
    %191 = arith.mulf %182, %149 : vector<2x32xf32>
    %192 = arith.mulf %176, %184 : vector<2x32xf32>
    %193 = arith.addf %191, %192 : vector<2x32xf32>
    %194 = math.tanh %193 : vector<2x32xf32>
    %195 = arith.mulf %190, %194 : vector<2x32xf32>
    %cst_90 = arith.constant dense<0.000000e+00> : vector<2x16xf32>
    %196 = tpu.matmul %195, %131, %cst_90 {dimension_numbers = #tpu.dot_dimension_numbers<[1], [0], [0], [1], [0, 0, 1, 1], [], []>} : vector<2x32xf32>, vector<32x16xf32>, vector<2x16xf32> -> vector<2x16xf32>
    %197 = vector.broadcast %132 : vector<1x16xf32> to vector<2x16xf32>
    %198 = arith.addf %196, %197 : vector<2x16xf32>
    %cst_91 = arith.constant 0.000000e+00 : f32
    %199 = vector.broadcast %cst_91 : f32 to vector<2x16xf32>
    %200 = arith.maximumf %198, %199 : vector<2x16xf32>
    %cst_92 = arith.constant dense<0.000000e+00> : vector<2x8xf32>
    %201 = tpu.matmul %200, %133, %cst_92 {dimension_numbers = #tpu.dot_dimension_numbers<[1], [0], [0], [1], [0, 0, 1, 1], [], []>} : vector<2x16xf32>, vector<16x8xf32>, vector<2x8xf32> -> vector<2x8xf32>
    %202 = vector.broadcast %134 : vector<1x8xf32> to vector<2x8xf32>
    %203 = arith.addf %201, %202 : vector<2x8xf32>
    %204 = math.tanh %203 : vector<2x8xf32>
    %cst_93 = arith.constant 2.000000e+00 : f32
    %205 = vector.broadcast %cst_93 : f32 to vector<2x8xf32>
    %206 = arith.addf %204, %205 : vector<2x8xf32>
    %c1_94 = arith.constant 1 : index
    %c0_95 = arith.constant 0 : index
    %c0_96 = arith.constant 0 : index
    %207 = vector.load %arg22[%c1_94, %c0_95, %c0_96] : memref<8x2x8xf32, #tpu.memory_space<vmem>>, vector<1x2x8xf32>
    %208 = vector.shape_cast %207 : vector<1x2x8xf32> to vector<2x8xf32>
    %209 = vector.shape_cast %206 : vector<2x8xf32> to vector<1x2x8xf32>
    tpu.vector_store %arg22[%c1_94, %c0_95, %c0_96], %209 {strides = array<i32>} : memref<8x2x8xf32, #tpu.memory_space<vmem>>, vector<1x2x8xf32>,
    %210 = vector.extract_strided_slice %129 {offsets = [4, 0], sizes = [2, 128], strides = [1, 1]} : vector<16x128xf32> to vector<2x128xf32>
    %211 = vector.broadcast %117 : vector<1x128xf32> to vector<2x128xf32>
    %212 = arith.addf %210, %211 : vector<2x128xf32>
    %cst_97 = arith.constant dense<0.000000e+00> : vector<2x128xf32>
    %213 = tpu.matmul %195, %130, %cst_97 {dimension_numbers = #tpu.dot_dimension_numbers<[1], [0], [0], [1], [0, 0, 1, 1], [], []>} : vector<2x32xf32>, vector<32x128xf32>, vector<2x128xf32> -> vector<2x128xf32>
    %214 = arith.addf %212, %213 : vector<2x128xf32>
    %215 = vector.extract_strided_slice %214 {offsets = [0, 0], sizes = [2, 32], strides = [1, 1]} : vector<2x128xf32> to vector<2x32xf32>
    %216 = arith.negf %215 : vector<2x32xf32>
    %217 = math.exp %216 : vector<2x32xf32>
    %cst_98 = arith.constant 1.000000e+00 : f32
    %218 = vector.broadcast %cst_98 : f32 to vector<2x32xf32>
    %219 = arith.addf %218, %217 : vector<2x32xf32>
    %220 = arith.divf %218, %219 : vector<2x32xf32>
    %221 = vector.extract_strided_slice %214 {offsets = [0, 32], sizes = [2, 32], strides = [1, 1]} : vector<2x128xf32> to vector<2x32xf32>
    %222 = arith.negf %221 : vector<2x32xf32>
    %223 = math.exp %222 : vector<2x32xf32>
    %cst_99 = arith.constant 1.000000e+00 : f32
    %224 = vector.broadcast %cst_99 : f32 to vector<2x32xf32>
    %225 = arith.addf %224, %223 : vector<2x32xf32>
    %226 = arith.divf %224, %225 : vector<2x32xf32>
    %227 = vector.extract_strided_slice %214 {offsets = [0, 64], sizes = [2, 32], strides = [1, 1]} : vector<2x128xf32> to vector<2x32xf32>
    %228 = math.tanh %227 : vector<2x32xf32>
    %229 = vector.extract_strided_slice %214 {offsets = [0, 96], sizes = [2, 32], strides = [1, 1]} : vector<2x128xf32> to vector<2x32xf32>
    %230 = arith.negf %229 : vector<2x32xf32>
    %231 = math.exp %230 : vector<2x32xf32>
    %cst_100 = arith.constant 1.000000e+00 : f32
    %232 = vector.broadcast %cst_100 : f32 to vector<2x32xf32>
    %233 = arith.addf %232, %231 : vector<2x32xf32>
    %234 = arith.divf %232, %233 : vector<2x32xf32>
    %235 = arith.mulf %226, %193 : vector<2x32xf32>
    %236 = arith.mulf %220, %228 : vector<2x32xf32>
    %237 = arith.addf %235, %236 : vector<2x32xf32>
    %238 = math.tanh %237 : vector<2x32xf32>
    %239 = arith.mulf %234, %238 : vector<2x32xf32>
    %cst_101 = arith.constant dense<0.000000e+00> : vector<2x16xf32>
    %240 = tpu.matmul %239, %131, %cst_101 {dimension_numbers = #tpu.dot_dimension_numbers<[1], [0], [0], [1], [0, 0, 1, 1], [], []>} : vector<2x32xf32>, vector<32x16xf32>, vector<2x16xf32> -> vector<2x16xf32>
    %241 = vector.broadcast %132 : vector<1x16xf32> to vector<2x16xf32>
    %242 = arith.addf %240, %241 : vector<2x16xf32>
    %cst_102 = arith.constant 0.000000e+00 : f32
    %243 = vector.broadcast %cst_102 : f32 to vector<2x16xf32>
    %244 = arith.maximumf %242, %243 : vector<2x16xf32>
    %cst_103 = arith.constant dense<0.000000e+00> : vector<2x8xf32>
    %245 = tpu.matmul %244, %133, %cst_103 {dimension_numbers = #tpu.dot_dimension_numbers<[1], [0], [0], [1], [0, 0, 1, 1], [], []>} : vector<2x16xf32>, vector<16x8xf32>, vector<2x8xf32> -> vector<2x8xf32>
    %246 = vector.broadcast %134 : vector<1x8xf32> to vector<2x8xf32>
    %247 = arith.addf %245, %246 : vector<2x8xf32>
    %248 = math.tanh %247 : vector<2x8xf32>
    %cst_104 = arith.constant 4.000000e+00 : f32
    %249 = vector.broadcast %cst_104 : f32 to vector<2x8xf32>
    %250 = arith.addf %248, %249 : vector<2x8xf32>
    %c2_105 = arith.constant 2 : index
    %c0_106 = arith.constant 0 : index
    %c0_107 = arith.constant 0 : index
    %251 = vector.load %arg22[%c2_105, %c0_106, %c0_107] : memref<8x2x8xf32, #tpu.memory_space<vmem>>, vector<1x2x8xf32>
    %252 = vector.shape_cast %251 : vector<1x2x8xf32> to vector<2x8xf32>
    %253 = vector.shape_cast %250 : vector<2x8xf32> to vector<1x2x8xf32>
    tpu.vector_store %arg22[%c2_105, %c0_106, %c0_107], %253 {strides = array<i32>} : memref<8x2x8xf32, #tpu.memory_space<vmem>>, vector<1x2x8xf32>,
    %254 = vector.extract_strided_slice %129 {offsets = [6, 0], sizes = [2, 128], strides = [1, 1]} : vector<16x128xf32> to vector<2x128xf32>
    %255 = vector.broadcast %117 : vector<1x128xf32> to vector<2x128xf32>
    %256 = arith.addf %254, %255 : vector<2x128xf32>
    %cst_108 = arith.constant dense<0.000000e+00> : vector<2x128xf32>
    %257 = tpu.matmul %239, %130, %cst_108 {dimension_numbers = #tpu.dot_dimension_numbers<[1], [0], [0], [1], [0, 0, 1, 1], [], []>} : vector<2x32xf32>, vector<32x128xf32>, vector<2x128xf32> -> vector<2x128xf32>
    %258 = arith.addf %256, %257 : vector<2x128xf32>
    %259 = vector.extract_strided_slice %258 {offsets = [0, 0], sizes = [2, 32], strides = [1, 1]} : vector<2x128xf32> to vector<2x32xf32>
    %260 = arith.negf %259 : vector<2x32xf32>
    %261 = math.exp %260 : vector<2x32xf32>
    %cst_109 = arith.constant 1.000000e+00 : f32
    %262 = vector.broadcast %cst_109 : f32 to vector<2x32xf32>
    %263 = arith.addf %262, %261 : vector<2x32xf32>
    %264 = arith.divf %262, %263 : vector<2x32xf32>
    %265 = vector.extract_strided_slice %258 {offsets = [0, 32], sizes = [2, 32], strides = [1, 1]} : vector<2x128xf32> to vector<2x32xf32>
    %266 = arith.negf %265 : vector<2x32xf32>
    %267 = math.exp %266 : vector<2x32xf32>
    %cst_110 = arith.constant 1.000000e+00 : f32
    %268 = vector.broadcast %cst_110 : f32 to vector<2x32xf32>
    %269 = arith.addf %268, %267 : vector<2x32xf32>
    %270 = arith.divf %268, %269 : vector<2x32xf32>
    %271 = vector.extract_strided_slice %258 {offsets = [0, 64], sizes = [2, 32], strides = [1, 1]} : vector<2x128xf32> to vector<2x32xf32>
    %272 = math.tanh %271 : vector<2x32xf32>
    %273 = vector.extract_strided_slice %258 {offsets = [0, 96], sizes = [2, 32], strides = [1, 1]} : vector<2x128xf32> to vector<2x32xf32>
    %274 = arith.negf %273 : vector<2x32xf32>
    %275 = math.exp %274 : vector<2x32xf32>
    %cst_111 = arith.constant 1.000000e+00 : f32
    %276 = vector.broadcast %cst_111 : f32 to vector<2x32xf32>
    %277 = arith.addf %276, %275 : vector<2x32xf32>
    %278 = arith.divf %276, %277 : vector<2x32xf32>
    %279 = arith.mulf %270, %237 : vector<2x32xf32>
    %280 = arith.mulf %264, %272 : vector<2x32xf32>
    %281 = arith.addf %279, %280 : vector<2x32xf32>
    %282 = math.tanh %281 : vector<2x32xf32>
    %283 = arith.mulf %278, %282 : vector<2x32xf32>
    %cst_112 = arith.constant dense<0.000000e+00> : vector<2x16xf32>
    %284 = tpu.matmul %283, %131, %cst_112 {dimension_numbers = #tpu.dot_dimension_numbers<[1], [0], [0], [1], [0, 0, 1, 1], [], []>} : vector<2x32xf32>, vector<32x16xf32>, vector<2x16xf32> -> vector<2x16xf32>
    %285 = vector.broadcast %132 : vector<1x16xf32> to vector<2x16xf32>
    %286 = arith.addf %284, %285 : vector<2x16xf32>
    %cst_113 = arith.constant 0.000000e+00 : f32
    %287 = vector.broadcast %cst_113 : f32 to vector<2x16xf32>
    %288 = arith.maximumf %286, %287 : vector<2x16xf32>
    %cst_114 = arith.constant dense<0.000000e+00> : vector<2x8xf32>
    %289 = tpu.matmul %288, %133, %cst_114 {dimension_numbers = #tpu.dot_dimension_numbers<[1], [0], [0], [1], [0, 0, 1, 1], [], []>} : vector<2x16xf32>, vector<16x8xf32>, vector<2x8xf32> -> vector<2x8xf32>
    %290 = vector.broadcast %134 : vector<1x8xf32> to vector<2x8xf32>
    %291 = arith.addf %289, %290 : vector<2x8xf32>
    %292 = math.tanh %291 : vector<2x8xf32>
    %cst_115 = arith.constant 6.000000e+00 : f32
    %293 = vector.broadcast %cst_115 : f32 to vector<2x8xf32>
    %294 = arith.addf %292, %293 : vector<2x8xf32>
    %c3_116 = arith.constant 3 : index
    %c0_117 = arith.constant 0 : index
    %c0_118 = arith.constant 0 : index
    %295 = vector.load %arg22[%c3_116, %c0_117, %c0_118] : memref<8x2x8xf32, #tpu.memory_space<vmem>>, vector<1x2x8xf32>
    %296 = vector.shape_cast %295 : vector<1x2x8xf32> to vector<2x8xf32>
    %297 = vector.shape_cast %294 : vector<2x8xf32> to vector<1x2x8xf32>
    tpu.vector_store %arg22[%c3_116, %c0_117, %c0_118], %297 {strides = array<i32>} : memref<8x2x8xf32, #tpu.memory_space<vmem>>, vector<1x2x8xf32>,
    %298 = vector.extract_strided_slice %129 {offsets = [8, 0], sizes = [2, 128], strides = [1, 1]} : vector<16x128xf32> to vector<2x128xf32>
    %299 = vector.broadcast %117 : vector<1x128xf32> to vector<2x128xf32>
    %300 = arith.addf %298, %299 : vector<2x128xf32>
    %cst_119 = arith.constant dense<0.000000e+00> : vector<2x128xf32>
    %301 = tpu.matmul %283, %130, %cst_119 {dimension_numbers = #tpu.dot_dimension_numbers<[1], [0], [0], [1], [0, 0, 1, 1], [], []>} : vector<2x32xf32>, vector<32x128xf32>, vector<2x128xf32> -> vector<2x128xf32>
    %302 = arith.addf %300, %301 : vector<2x128xf32>
    %303 = vector.extract_strided_slice %302 {offsets = [0, 0], sizes = [2, 32], strides = [1, 1]} : vector<2x128xf32> to vector<2x32xf32>
    %304 = arith.negf %303 : vector<2x32xf32>
    %305 = math.exp %304 : vector<2x32xf32>
    %cst_120 = arith.constant 1.000000e+00 : f32
    %306 = vector.broadcast %cst_120 : f32 to vector<2x32xf32>
    %307 = arith.addf %306, %305 : vector<2x32xf32>
    %308 = arith.divf %306, %307 : vector<2x32xf32>
    %309 = vector.extract_strided_slice %302 {offsets = [0, 32], sizes = [2, 32], strides = [1, 1]} : vector<2x128xf32> to vector<2x32xf32>
    %310 = arith.negf %309 : vector<2x32xf32>
    %311 = math.exp %310 : vector<2x32xf32>
    %cst_121 = arith.constant 1.000000e+00 : f32
    %312 = vector.broadcast %cst_121 : f32 to vector<2x32xf32>
    %313 = arith.addf %312, %311 : vector<2x32xf32>
    %314 = arith.divf %312, %313 : vector<2x32xf32>
    %315 = vector.extract_strided_slice %302 {offsets = [0, 64], sizes = [2, 32], strides = [1, 1]} : vector<2x128xf32> to vector<2x32xf32>
    %316 = math.tanh %315 : vector<2x32xf32>
    %317 = vector.extract_strided_slice %302 {offsets = [0, 96], sizes = [2, 32], strides = [1, 1]} : vector<2x128xf32> to vector<2x32xf32>
    %318 = arith.negf %317 : vector<2x32xf32>
    %319 = math.exp %318 : vector<2x32xf32>
    %cst_122 = arith.constant 1.000000e+00 : f32
    %320 = vector.broadcast %cst_122 : f32 to vector<2x32xf32>
    %321 = arith.addf %320, %319 : vector<2x32xf32>
    %322 = arith.divf %320, %321 : vector<2x32xf32>
    %323 = arith.mulf %314, %281 : vector<2x32xf32>
    %324 = arith.mulf %308, %316 : vector<2x32xf32>
    %325 = arith.addf %323, %324 : vector<2x32xf32>
    %326 = math.tanh %325 : vector<2x32xf32>
    %327 = arith.mulf %322, %326 : vector<2x32xf32>
    %cst_123 = arith.constant dense<0.000000e+00> : vector<2x16xf32>
    %328 = tpu.matmul %327, %131, %cst_123 {dimension_numbers = #tpu.dot_dimension_numbers<[1], [0], [0], [1], [0, 0, 1, 1], [], []>} : vector<2x32xf32>, vector<32x16xf32>, vector<2x16xf32> -> vector<2x16xf32>
    %329 = vector.broadcast %132 : vector<1x16xf32> to vector<2x16xf32>
    %330 = arith.addf %328, %329 : vector<2x16xf32>
    %cst_124 = arith.constant 0.000000e+00 : f32
    %331 = vector.broadcast %cst_124 : f32 to vector<2x16xf32>
    %332 = arith.maximumf %330, %331 : vector<2x16xf32>
    %cst_125 = arith.constant dense<0.000000e+00> : vector<2x8xf32>
    %333 = tpu.matmul %332, %133, %cst_125 {dimension_numbers = #tpu.dot_dimension_numbers<[1], [0], [0], [1], [0, 0, 1, 1], [], []>} : vector<2x16xf32>, vector<16x8xf32>, vector<2x8xf32> -> vector<2x8xf32>
    %334 = vector.broadcast %134 : vector<1x8xf32> to vector<2x8xf32>
    %335 = arith.addf %333, %334 : vector<2x8xf32>
    %336 = math.tanh %335 : vector<2x8xf32>
    %cst_126 = arith.constant 8.000000e+00 : f32
    %337 = vector.broadcast %cst_126 : f32 to vector<2x8xf32>
    %338 = arith.addf %336, %337 : vector<2x8xf32>
    %c4_127 = arith.constant 4 : index
    %c0_128 = arith.constant 0 : index
    %c0_129 = arith.constant 0 : index
    %339 = vector.load %arg22[%c4_127, %c0_128, %c0_129] : memref<8x2x8xf32, #tpu.memory_space<vmem>>, vector<1x2x8xf32>
    %340 = vector.shape_cast %339 : vector<1x2x8xf32> to vector<2x8xf32>
    %341 = vector.shape_cast %338 : vector<2x8xf32> to vector<1x2x8xf32>
    tpu.vector_store %arg22[%c4_127, %c0_128, %c0_129], %341 {strides = array<i32>} : memref<8x2x8xf32, #tpu.memory_space<vmem>>, vector<1x2x8xf32>,
    %342 = vector.extract_strided_slice %129 {offsets = [10, 0], sizes = [2, 128], strides = [1, 1]} : vector<16x128xf32> to vector<2x128xf32>
    %343 = vector.broadcast %117 : vector<1x128xf32> to vector<2x128xf32>
    %344 = arith.addf %342, %343 : vector<2x128xf32>
    %cst_130 = arith.constant dense<0.000000e+00> : vector<2x128xf32>
    %345 = tpu.matmul %327, %130, %cst_130 {dimension_numbers = #tpu.dot_dimension_numbers<[1], [0], [0], [1], [0, 0, 1, 1], [], []>} : vector<2x32xf32>, vector<32x128xf32>, vector<2x128xf32> -> vector<2x128xf32>
    %346 = arith.addf %344, %345 : vector<2x128xf32>
    %347 = vector.extract_strided_slice %346 {offsets = [0, 0], sizes = [2, 32], strides = [1, 1]} : vector<2x128xf32> to vector<2x32xf32>
    %348 = arith.negf %347 : vector<2x32xf32>
    %349 = math.exp %348 : vector<2x32xf32>
    %cst_131 = arith.constant 1.000000e+00 : f32
    %350 = vector.broadcast %cst_131 : f32 to vector<2x32xf32>
    %351 = arith.addf %350, %349 : vector<2x32xf32>
    %352 = arith.divf %350, %351 : vector<2x32xf32>
    %353 = vector.extract_strided_slice %346 {offsets = [0, 32], sizes = [2, 32], strides = [1, 1]} : vector<2x128xf32> to vector<2x32xf32>
    %354 = arith.negf %353 : vector<2x32xf32>
    %355 = math.exp %354 : vector<2x32xf32>
    %cst_132 = arith.constant 1.000000e+00 : f32
    %356 = vector.broadcast %cst_132 : f32 to vector<2x32xf32>
    %357 = arith.addf %356, %355 : vector<2x32xf32>
    %358 = arith.divf %356, %357 : vector<2x32xf32>
    %359 = vector.extract_strided_slice %346 {offsets = [0, 64], sizes = [2, 32], strides = [1, 1]} : vector<2x128xf32> to vector<2x32xf32>
    %360 = math.tanh %359 : vector<2x32xf32>
    %361 = vector.extract_strided_slice %346 {offsets = [0, 96], sizes = [2, 32], strides = [1, 1]} : vector<2x128xf32> to vector<2x32xf32>
    %362 = arith.negf %361 : vector<2x32xf32>
    %363 = math.exp %362 : vector<2x32xf32>
    %cst_133 = arith.constant 1.000000e+00 : f32
    %364 = vector.broadcast %cst_133 : f32 to vector<2x32xf32>
    %365 = arith.addf %364, %363 : vector<2x32xf32>
    %366 = arith.divf %364, %365 : vector<2x32xf32>
    %367 = arith.mulf %358, %325 : vector<2x32xf32>
    %368 = arith.mulf %352, %360 : vector<2x32xf32>
    %369 = arith.addf %367, %368 : vector<2x32xf32>
    %370 = math.tanh %369 : vector<2x32xf32>
    %371 = arith.mulf %366, %370 : vector<2x32xf32>
    %cst_134 = arith.constant dense<0.000000e+00> : vector<2x16xf32>
    %372 = tpu.matmul %371, %131, %cst_134 {dimension_numbers = #tpu.dot_dimension_numbers<[1], [0], [0], [1], [0, 0, 1, 1], [], []>} : vector<2x32xf32>, vector<32x16xf32>, vector<2x16xf32> -> vector<2x16xf32>
    %373 = vector.broadcast %132 : vector<1x16xf32> to vector<2x16xf32>
    %374 = arith.addf %372, %373 : vector<2x16xf32>
    %cst_135 = arith.constant 0.000000e+00 : f32
    %375 = vector.broadcast %cst_135 : f32 to vector<2x16xf32>
    %376 = arith.maximumf %374, %375 : vector<2x16xf32>
    %cst_136 = arith.constant dense<0.000000e+00> : vector<2x8xf32>
    %377 = tpu.matmul %376, %133, %cst_136 {dimension_numbers = #tpu.dot_dimension_numbers<[1], [0], [0], [1], [0, 0, 1, 1], [], []>} : vector<2x16xf32>, vector<16x8xf32>, vector<2x8xf32> -> vector<2x8xf32>
    %378 = vector.broadcast %134 : vector<1x8xf32> to vector<2x8xf32>
    %379 = arith.addf %377, %378 : vector<2x8xf32>
    %380 = math.tanh %379 : vector<2x8xf32>
    %cst_137 = arith.constant 1.000000e+01 : f32
    %381 = vector.broadcast %cst_137 : f32 to vector<2x8xf32>
    %382 = arith.addf %380, %381 : vector<2x8xf32>
    %c5_138 = arith.constant 5 : index
    %c0_139 = arith.constant 0 : index
    %c0_140 = arith.constant 0 : index
    %383 = vector.load %arg22[%c5_138, %c0_139, %c0_140] : memref<8x2x8xf32, #tpu.memory_space<vmem>>, vector<1x2x8xf32>
    %384 = vector.shape_cast %383 : vector<1x2x8xf32> to vector<2x8xf32>
    %385 = vector.shape_cast %382 : vector<2x8xf32> to vector<1x2x8xf32>
    tpu.vector_store %arg22[%c5_138, %c0_139, %c0_140], %385 {strides = array<i32>} : memref<8x2x8xf32, #tpu.memory_space<vmem>>, vector<1x2x8xf32>,
    %386 = vector.extract_strided_slice %129 {offsets = [12, 0], sizes = [2, 128], strides = [1, 1]} : vector<16x128xf32> to vector<2x128xf32>
    %387 = vector.broadcast %117 : vector<1x128xf32> to vector<2x128xf32>
    %388 = arith.addf %386, %387 : vector<2x128xf32>
    %cst_141 = arith.constant dense<0.000000e+00> : vector<2x128xf32>
    %389 = tpu.matmul %371, %130, %cst_141 {dimension_numbers = #tpu.dot_dimension_numbers<[1], [0], [0], [1], [0, 0, 1, 1], [], []>} : vector<2x32xf32>, vector<32x128xf32>, vector<2x128xf32> -> vector<2x128xf32>
    %390 = arith.addf %388, %389 : vector<2x128xf32>
    %391 = vector.extract_strided_slice %390 {offsets = [0, 0], sizes = [2, 32], strides = [1, 1]} : vector<2x128xf32> to vector<2x32xf32>
    %392 = arith.negf %391 : vector<2x32xf32>
    %393 = math.exp %392 : vector<2x32xf32>
    %cst_142 = arith.constant 1.000000e+00 : f32
    %394 = vector.broadcast %cst_142 : f32 to vector<2x32xf32>
    %395 = arith.addf %394, %393 : vector<2x32xf32>
    %396 = arith.divf %394, %395 : vector<2x32xf32>
    %397 = vector.extract_strided_slice %390 {offsets = [0, 32], sizes = [2, 32], strides = [1, 1]} : vector<2x128xf32> to vector<2x32xf32>
    %398 = arith.negf %397 : vector<2x32xf32>
    %399 = math.exp %398 : vector<2x32xf32>
    %cst_143 = arith.constant 1.000000e+00 : f32
    %400 = vector.broadcast %cst_143 : f32 to vector<2x32xf32>
    %401 = arith.addf %400, %399 : vector<2x32xf32>
    %402 = arith.divf %400, %401 : vector<2x32xf32>
    %403 = vector.extract_strided_slice %390 {offsets = [0, 64], sizes = [2, 32], strides = [1, 1]} : vector<2x128xf32> to vector<2x32xf32>
    %404 = math.tanh %403 : vector<2x32xf32>
    %405 = vector.extract_strided_slice %390 {offsets = [0, 96], sizes = [2, 32], strides = [1, 1]} : vector<2x128xf32> to vector<2x32xf32>
    %406 = arith.negf %405 : vector<2x32xf32>
    %407 = math.exp %406 : vector<2x32xf32>
    %cst_144 = arith.constant 1.000000e+00 : f32
    %408 = vector.broadcast %cst_144 : f32 to vector<2x32xf32>
    %409 = arith.addf %408, %407 : vector<2x32xf32>
    %410 = arith.divf %408, %409 : vector<2x32xf32>
    %411 = arith.mulf %402, %369 : vector<2x32xf32>
    %412 = arith.mulf %396, %404 : vector<2x32xf32>
    %413 = arith.addf %411, %412 : vector<2x32xf32>
    %414 = math.tanh %413 : vector<2x32xf32>
    %415 = arith.mulf %410, %414 : vector<2x32xf32>
    %cst_145 = arith.constant dense<0.000000e+00> : vector<2x16xf32>
    %416 = tpu.matmul %415, %131, %cst_145 {dimension_numbers = #tpu.dot_dimension_numbers<[1], [0], [0], [1], [0, 0, 1, 1], [], []>} : vector<2x32xf32>, vector<32x16xf32>, vector<2x16xf32> -> vector<2x16xf32>
    %417 = vector.broadcast %132 : vector<1x16xf32> to vector<2x16xf32>
    %418 = arith.addf %416, %417 : vector<2x16xf32>
    %cst_146 = arith.constant 0.000000e+00 : f32
    %419 = vector.broadcast %cst_146 : f32 to vector<2x16xf32>
    %420 = arith.maximumf %418, %419 : vector<2x16xf32>
    %cst_147 = arith.constant dense<0.000000e+00> : vector<2x8xf32>
    %421 = tpu.matmul %420, %133, %cst_147 {dimension_numbers = #tpu.dot_dimension_numbers<[1], [0], [0], [1], [0, 0, 1, 1], [], []>} : vector<2x16xf32>, vector<16x8xf32>, vector<2x8xf32> -> vector<2x8xf32>
    %422 = vector.broadcast %134 : vector<1x8xf32> to vector<2x8xf32>
    %423 = arith.addf %421, %422 : vector<2x8xf32>
    %424 = math.tanh %423 : vector<2x8xf32>
    %cst_148 = arith.constant 1.200000e+01 : f32
    %425 = vector.broadcast %cst_148 : f32 to vector<2x8xf32>
    %426 = arith.addf %424, %425 : vector<2x8xf32>
    %c6_149 = arith.constant 6 : index
    %c0_150 = arith.constant 0 : index
    %c0_151 = arith.constant 0 : index
    %427 = vector.load %arg22[%c6_149, %c0_150, %c0_151] : memref<8x2x8xf32, #tpu.memory_space<vmem>>, vector<1x2x8xf32>
    %428 = vector.shape_cast %427 : vector<1x2x8xf32> to vector<2x8xf32>
    %429 = vector.shape_cast %426 : vector<2x8xf32> to vector<1x2x8xf32>
    tpu.vector_store %arg22[%c6_149, %c0_150, %c0_151], %429 {strides = array<i32>} : memref<8x2x8xf32, #tpu.memory_space<vmem>>, vector<1x2x8xf32>,
    %430 = vector.extract_strided_slice %129 {offsets = [14, 0], sizes = [2, 128], strides = [1, 1]} : vector<16x128xf32> to vector<2x128xf32>
    %431 = vector.broadcast %117 : vector<1x128xf32> to vector<2x128xf32>
    %432 = arith.addf %430, %431 : vector<2x128xf32>
    %cst_152 = arith.constant dense<0.000000e+00> : vector<2x128xf32>
    %433 = tpu.matmul %415, %130, %cst_152 {dimension_numbers = #tpu.dot_dimension_numbers<[1], [0], [0], [1], [0, 0, 1, 1], [], []>} : vector<2x32xf32>, vector<32x128xf32>, vector<2x128xf32> -> vector<2x128xf32>
    %434 = arith.addf %432, %433 : vector<2x128xf32>
    %435 = vector.extract_strided_slice %434 {offsets = [0, 0], sizes = [2, 32], strides = [1, 1]} : vector<2x128xf32> to vector<2x32xf32>
    %436 = arith.negf %435 : vector<2x32xf32>
    %437 = math.exp %436 : vector<2x32xf32>
    %cst_153 = arith.constant 1.000000e+00 : f32
    %438 = vector.broadcast %cst_153 : f32 to vector<2x32xf32>
    %439 = arith.addf %438, %437 : vector<2x32xf32>
    %440 = arith.divf %438, %439 : vector<2x32xf32>
    %441 = vector.extract_strided_slice %434 {offsets = [0, 32], sizes = [2, 32], strides = [1, 1]} : vector<2x128xf32> to vector<2x32xf32>
    %442 = arith.negf %441 : vector<2x32xf32>
    %443 = math.exp %442 : vector<2x32xf32>
    %cst_154 = arith.constant 1.000000e+00 : f32
    %444 = vector.broadcast %cst_154 : f32 to vector<2x32xf32>
    %445 = arith.addf %444, %443 : vector<2x32xf32>
    %446 = arith.divf %444, %445 : vector<2x32xf32>
    %447 = vector.extract_strided_slice %434 {offsets = [0, 64], sizes = [2, 32], strides = [1, 1]} : vector<2x128xf32> to vector<2x32xf32>
    %448 = math.tanh %447 : vector<2x32xf32>
    %449 = vector.extract_strided_slice %434 {offsets = [0, 96], sizes = [2, 32], strides = [1, 1]} : vector<2x128xf32> to vector<2x32xf32>
    %450 = arith.negf %449 : vector<2x32xf32>
    %451 = math.exp %450 : vector<2x32xf32>
    %cst_155 = arith.constant 1.000000e+00 : f32
    %452 = vector.broadcast %cst_155 : f32 to vector<2x32xf32>
    %453 = arith.addf %452, %451 : vector<2x32xf32>
    %454 = arith.divf %452, %453 : vector<2x32xf32>
    %455 = arith.mulf %446, %413 : vector<2x32xf32>
    %456 = arith.mulf %440, %448 : vector<2x32xf32>
    %457 = arith.addf %455, %456 : vector<2x32xf32>
    %458 = math.tanh %457 : vector<2x32xf32>
    %459 = arith.mulf %454, %458 : vector<2x32xf32>
    %cst_156 = arith.constant dense<0.000000e+00> : vector<2x16xf32>
    %460 = tpu.matmul %459, %131, %cst_156 {dimension_numbers = #tpu.dot_dimension_numbers<[1], [0], [0], [1], [0, 0, 1, 1], [], []>} : vector<2x32xf32>, vector<32x16xf32>, vector<2x16xf32> -> vector<2x16xf32>
    %461 = vector.broadcast %132 : vector<1x16xf32> to vector<2x16xf32>
    %462 = arith.addf %460, %461 : vector<2x16xf32>
    %cst_157 = arith.constant 0.000000e+00 : f32
    %463 = vector.broadcast %cst_157 : f32 to vector<2x16xf32>
    %464 = arith.maximumf %462, %463 : vector<2x16xf32>
    %cst_158 = arith.constant dense<0.000000e+00> : vector<2x8xf32>
    %465 = tpu.matmul %464, %133, %cst_158 {dimension_numbers = #tpu.dot_dimension_numbers<[1], [0], [0], [1], [0, 0, 1, 1], [], []>} : vector<2x16xf32>, vector<16x8xf32>, vector<2x8xf32> -> vector<2x8xf32>
    %466 = vector.broadcast %134 : vector<1x8xf32> to vector<2x8xf32>
    %467 = arith.addf %465, %466 : vector<2x8xf32>
    %468 = math.tanh %467 : vector<2x8xf32>
    %cst_159 = arith.constant 1.400000e+01 : f32
    %469 = vector.broadcast %cst_159 : f32 to vector<2x8xf32>
    %470 = arith.addf %468, %469 : vector<2x8xf32>
    %c7_160 = arith.constant 7 : index
    %c0_161 = arith.constant 0 : index
    %c0_162 = arith.constant 0 : index
    %471 = vector.load %arg22[%c7_160, %c0_161, %c0_162] : memref<8x2x8xf32, #tpu.memory_space<vmem>>, vector<1x2x8xf32>
    %472 = vector.shape_cast %471 : vector<1x2x8xf32> to vector<2x8xf32>
    %473 = vector.shape_cast %470 : vector<2x8xf32> to vector<1x2x8xf32>
    tpu.vector_store %arg22[%c7_160, %c0_161, %c0_162], %473 {strides = array<i32>} : memref<8x2x8xf32, #tpu.memory_space<vmem>>, vector<1x2x8xf32>,
    return
  }
}

</mosaic_0001>

<bundles_post_ra>
// kernel: auc_lstm_forward.1
= control target key start
LH: loop header
LB: loop body
LE: loop exit
PB: predicated region body
PF: predicated region fallthrough
CT: control target
= control target key end

     0   :  { %s5254_s0 = inlined_call_operand.vmem [shape: f32[20,60], index: 0, kind: input, shape index: {}]   ;;  %s5255_s1 = inlined_call_operand.vmem [shape: f32[2,4], index: 1, kind: input, shape index: {}]   ;;  %s5256_s2 = inlined_call_operand.vmem [shape: f32[16,2], index: 2, kind: input, shape index: {}]   ;;  %s5257_s3 = inlined_call_operand.vmem [shape: f32[60,64], index: 3, kind: input, shape index: {}]   ;;  %s5258_s4 = inlined_call_operand.vmem [shape: f32[1,64], index: 4, kind: input, shape index: {}]   ;;  %s5259_s5 = inlined_call_operand.vmem [shape: f32[9,64,16], index: 5, kind: input, shape index: {}]   ;;  %s5260_s6 = inlined_call_operand.vmem [shape: f32[1,16], index: 6, kind: input, shape index: {}]   ;;  %s5261_s7 = inlined_call_operand.vmem [shape: f32[16,28], index: 7, kind: input, shape index: {}]   ;;  %s5262_s8 = inlined_call_operand.vmem [shape: f32[1,28], index: 8, kind: input, shape index: {}]   ;;  %s5263_s9 = inlined_call_operand.vmem [shape: f32[16,32], index: 9, kind: input, shape index: {}]   ;;  %s5264_s10 = inlined_call_operand.vmem [shape: f32[1,32], index: 10, kind: input, shape index: {}]   ;;  %s5265_s11 = inlined_call_operand.vmem [shape: f32[4,128], index: 11, kind: input, shape index: {}]   ;;  %s5266_s12 = inlined_call_operand.vmem [shape: f32[2,128], index: 12, kind: input, shape index: {}]   ;;  %s5267_s13 = inlined_call_operand.vmem [shape: f32[28,128], index: 13, kind: input, shape index: {}]   ;;  %s5268_s14 = inlined_call_operand.vmem [shape: f32[2,128], index: 14, kind: input, shape index: {}]   ;;  %s5269_s15 = inlined_call_operand.vmem [shape: f32[32,128], index: 15, kind: input, shape index: {}]   ;;  %s5270_s16 = inlined_call_operand.vmem [shape: f32[32,128], index: 16, kind: input, shape index: {}]   ;;  %s5271_s17 = inlined_call_operand.vmem [shape: f32[1,128], index: 17, kind: input, shape index: {}]   ;;  %s5272_s18 = inlined_call_operand.vmem [shape: f32[32,16], index: 18, kind: input, shape index: {}]   ;;  %s5273_s19 = inlined_call_operand.vmem [shape: f32[1,16], index: 19, kind: input, shape index: {}]   ;;  %s5274_s20 = inlined_call_operand.vmem [shape: f32[16,8], index: 20, kind: input, shape index: {}]   ;;  %s5275_s21 = inlined_call_operand.vmem [shape: f32[1,8], index: 21, kind: input, shape index: {}]   ;;  %s5276_s22 = inlined_call_operand.hbm [shape: f32[8,2,8], index: 22, kind: output, shape index: {}]  }
   0x1   :  { %5281 = sst [smem:[#allocation5_spill]] %s5254_s0 }
   0x2   :  { %5282 = sst [smem:[#allocation6_spill]] %s5255_s1 }
   0x3   :  { %5283 = sst [smem:[#allocation7_spill]] %s5256_s2 }
   0x4   :  { %5284 = sst [smem:[#allocation8_spill]] %s5257_s3 }
   0x5   :  { %5285 = sst [smem:[#allocation9_spill]] %s5258_s4 }
   0x6   :  { %5286 = sst [smem:[#allocation10_spill]] %s5259_s5 }
   0x7   :  { %5287 = sst [smem:[#allocation11_spill]] %s5260_s6 }
   0x8   :  { %s5288_s29 = sld [smem:[#allocation8_spill]]  ;;  %vm100_vm0 = vcmask 1043456   ;;  %v4242_v1 = vmov 0.0   ;;  %vm4243_vm1 = vmmov 0  }
   0x9   :  { %3671 = vmatprep.subr.mxu0 %v4242_v1  ;;  %3696 = vmatprep.subr.mxu1 %v4242_v1  ;;  %s5289_s24 = sld [smem:[#allocation10_spill]] }
   0xa   :  { %3687 = vmatprep.mubr.msk.f32.mxu0 %vm4243_vm1, %v4242_v1  ;;  %3712 = vmatprep.mubr.msk.f32.mxu1 %vm4243_vm1, %v4242_v1 }
   0xe   :  { %v82_v0 = vld [vmem:[%s5288_s29 + $0x38] sm:$0xf]  ;;  %v81_v2 = vld [vmem:[%s5288_s29 + $0x30] sm:$0xff]  ;;  %v80_v3 = vld [vmem:[%s5288_s29 + $0x28] sm:$0xff] }
   0xf   :  { %3672 = vmatpush3.msk.msra.mxu0 %vm100_vm0, %v82_v0  ;;  %v193_v4 = vld [vmem:[%s5289_s24 + $0x38] sm:$0xff]  ;;  %v192_v5 = vld [vmem:[%s5289_s24 + $0x30] sm:$0xff]  ;;  %v79_v6 = vld [vmem:[%s5288_s29 + $0x20] sm:$0xff] }
  0x10   :  { %3673 = vmatprep.subr.mxu0 %v4242_v1  ;;  %3697 = vmatpush3.msra.mxu1 %v193_v4  ;;  %v191_v7 = vld [vmem:[%s5289_s24 + $0x28] sm:$0xff]  ;;  %v78_v8 = vld [vmem:[%s5288_s29 + $0x18] sm:$0xff]  ;;  %v190_v9 = vld [vmem:[%s5289_s24 + $0x20] sm:$0xff] }
  0x11   :  { %3674 = vmatpush3.msra.mxu0 %v81_v2  ;;  %3698 = vmatprep.subr.mxu1 %v4242_v1 }
  0x12   :  { %3675 = vmatprep.subr.mxu0 %v4242_v1  ;;  %3699 = vmatpush3.msra.mxu1 %v192_v5 }
  0x13   :  { %3676 = vmatpush3.msra.mxu0 %v80_v3  ;;  %3700 = vmatprep.subr.mxu1 %v4242_v1 }
  0x14   :  { %3677 = vmatprep.subr.mxu0 %v4242_v1 }
  0x15   :  { %27 = vsyncpa [#allocation3], 0  ;;  %3678 = vmatpush3.msra.mxu0 %v79_v6  ;;  %3701 = vmatpush3.msra.mxu1 %v191_v7  ;;  %v77_v10 = vld [vmem:[%s5288_s29 + $0x10] sm:$0xff]  ;;  %v189_v11 = vld [vmem:[%s5289_s24 + $0x18] sm:$0xff]  ;;  %s5290_s0 = sld [smem:[#allocation5_spill]]  ;;  %vm90_vm2 = vcmask 490496  }
  0x16   :  { %3679 = vmatprep.subr.mxu0 %v4242_v1  ;;  %3702 = vmatprep.subr.mxu1 %v4242_v1  ;;  %v76_v12 = vld [vmem:[%s5288_s29 + $0x8] sm:$0xff]  ;;  %v188_v13 = vld [vmem:[%s5289_s24 + $0x10] sm:$0xff]  ;;  %v75_v14 = vld [vmem:[%s5288_s29] sm:$0xff]  ;;  %s5291_s4 = sld [smem:[#allocation9_spill]]  ;;  %vm194_vm3 = vcmask 523264   ;;  %vm937_vm4 = vcmask 130048  }
  0x17   :  { %3680 = vmatpush3.msra.mxu0 %v78_v8  ;;  %3703 = vmatpush3.msra.mxu1 %v190_v9  ;;  %v3361_v16 = vld [vmem:[%s5289_s24 + $0x78] sm:$0xff]  ;;  %v3360_v17 = vld [vmem:[%s5289_s24 + $0x70] sm:$0xff]  ;;  %v3359_v19 = vld [vmem:[%s5289_s24 + $0x68] sm:$0xff]  ;;  %s5292_s2 = sld [smem:[#allocation11_spill]]  ;;  %vm1157_vm5 = vcmask 228352   ;;  %vm1250_vm6 = vcmask 261120  }
  0x18   :  { %3681 = vmatprep.subr.mxu0 %v4242_v1  ;;  %3704 = vmatprep.subr.mxu1 %v4242_v1  ;;  %v3358_v20 = vld [vmem:[%s5289_s24 + $0x60] sm:$0xff]  ;;  %v3357_v21 = vld [vmem:[%s5289_s24 + $0x58] sm:$0xff]  ;;  %v187_v22 = vld [vmem:[%s5289_s24 + $0x8] sm:$0xff]  ;;  %s5293_s3 = sld [smem:[#allocation6_spill]]  ;;  %s4248_s5 = smov 64   ;;  %vm1541_vm7 = vcmask 58368  }
  0x19   :  { %3682 = vmatpush3.msra.mxu0 %v77_v10  ;;  %3705 = vmatpush3.msra.mxu1 %v189_v11  ;;  %v3356_v23 = vld [vmem:[%s5289_s24 + $0x50] sm:$0xff]  ;;  %v186_v25 = vld [vmem:[%s5289_s24] sm:$0xff]  ;;  %v3355_v26 = vld [vmem:[%s5289_s24 + $0x48] sm:$0xff]  ;;  %s5294_s28 = sld [smem:[#allocation7_spill]]  ;;  %s4249_s27 = smov 96  }
  0x1a   :  { %3683 = vmatprep.subr.mxu0 %v4242_v1  ;;  %3706 = vmatprep.subr.mxu1 %v4242_v1  ;;  %v3354_v27 = vld [vmem:[%s5289_s24 + $0x40] sm:$0xff]  ;;  %v3370_v33 = vld [vmem:[%s5289_s24 + $0xb8] sm:$0xff]  ;;  %v3369_v36 = vld [vmem:[%s5289_s24 + $0xb0] sm:$0xff] }
  0x1b   :  { %3684 = vmatpush3.msra.mxu0 %v76_v12  ;;  %v72_v15 = vld [vmem:[%s5290_s0] sm:$0xff]  ;;  %3707 = vmatpush3.msra.mxu1 %v188_v13  ;;  %v73_v18 = vld [vmem:[%s5290_s0 + $0x8] sm:$0xff]  ;;  %v74_v24 = vld [vmem:[%s5290_s0 + $0x10] sm:$0xf] }
  0x1c   :  { %3685 = vmatprep.subr.mxu0 %v4242_v1  ;;  %3708 = vmatprep.subr.mxu1 %v4242_v1  ;;  %v4492_v28 = vld [vmem:[%s5291_s4] ss:$0 sm:$0xff]  ;;  %v3379_v37 = vld [vmem:[%s5289_s24 + $0xf8] sm:$0xff]  ;;  %v3368_v39 = vld [vmem:[%s5289_s24 + $0xa8] sm:$0xff] }
  0x1d   :  { %3686 = vmatpush3.msra.mxu0 %v75_v14  ;;  %3709 = vmatpush3.msra.mxu1 %v187_v22  ;;  %v3378_v40 = vld [vmem:[%s5289_s24 + $0xf0] sm:$0xff]  ;;  %v3367_v41 = vld [vmem:[%s5289_s24 + $0xa0] sm:$0xff]  ;;  %v3377_v42 = vld [vmem:[%s5289_s24 + $0xe8] sm:$0xff] }
  0x1e   :  { %3688 = vmatmul.mubr.msk.f32.vlgmr.msra.gmra.mxu0 %vm90_vm2, %v72_v15  ;;  %3715 = vmatprep.subr.mxu0 %v4242_v1  ;;  %v3366_v43 = vld [vmem:[%s5289_s24 + $0x98] sm:$0xff]  ;;  %v3376_v44 = vld [vmem:[%s5289_s24 + $0xe0] sm:$0xff]  ;;  %v3365_v45 = vld [vmem:[%s5289_s24 + $0x90] sm:$0xff] }
  0x1f   :  { %3690 = vmatprep.mubr.msk.f32.mxu0 %vm4243_vm1, %v4242_v1  ;;  %3716 = vmatpush3.msra.mxu0 %v3361_v16  ;;  %v3375_v46 = vld [vmem:[%s5289_s24 + $0xd8] sm:$0xff]  ;;  %v3364_v47 = vld [vmem:[%s5289_s24 + $0x88] sm:$0xff]  ;;  %v3374_v48 = vld [vmem:[%s5289_s24 + $0xd0] sm:$0xff] }
  0x20   :  { %3717 = vmatprep.subr.mxu0 %v4242_v1  ;;  %3710 = vmatprep.subr.mxu1 %v4242_v1  ;;  %v3363_v49 = vld [vmem:[%s5289_s24 + $0x80] sm:$0xff]  ;;  %v3373_v50 = vld [vmem:[%s5289_s24 + $0xc8] sm:$0xff]  ;;  %v3388_v53 = vld [vmem:[%s5289_s24 + $0x138] sm:$0xff] }
  0x21   :  { %3718 = vmatpush3.msra.mxu0 %v3360_v17  ;;  %3711 = vmatpush3.msra.mxu1 %v186_v25  ;;  %v3372_v52 = vld [vmem:[%s5289_s24 + $0xc0] sm:$0xff]  ;;  %v3387_v55 = vld [vmem:[%s5289_s24 + $0x130] sm:$0xff]  ;;  %v3397_v56 = vld [vmem:[%s5289_s24 + $0x178] sm:$0xff] }
  0x22   :  { %3691 = vmatmul.mubr.msk.f32.gmra.mxu0 %vm90_vm2, %v73_v18  ;;  %3719 = vmatprep.subr.mxu0 %v4242_v1  ;;  %v3386_v57 = vld [vmem:[%s5289_s24 + $0x128] sm:$0xff]  ;;  %v3396_v58 = vld [vmem:[%s5289_s24 + $0x170] sm:$0xff]  ;;  %v3385_v59 = vld [vmem:[%s5289_s24 + $0x120] sm:$0xff] }
  0x23   :  { %3720 = vmatpush3.msra.mxu0 %v3359_v19  ;;  %3693 = vmatprep.mubr.msk.f32.mxu0 %vm4243_vm1, %v4242_v1  ;;  %v3395_v60 = vld [vmem:[%s5289_s24 + $0x168] sm:$0xff]  ;;  %v3384_v61 = vld [vmem:[%s5289_s24 + $0x118] sm:$0xff]  ;;  %v3394_v62 = vld [vmem:[%s5289_s24 + $0x160] sm:$0xff] }
  0x24   :  { %3721 = vmatprep.subr.mxu0 %v4242_v1  ;;  %3734 = vmatprep.subr.mxu1 %v4242_v1  ;;  %v3383_v63 = vld [vmem:[%s5289_s24 + $0x110] sm:$0xff]  ;;  %v3393_v0 = vld [vmem:[%s5289_s24 + $0x158] sm:$0xff]  ;;  %v3382_v2 = vld [vmem:[%s5289_s24 + $0x108] sm:$0xff] }
  0x25   :  { %3722 = vmatpush3.msra.mxu0 %v3358_v20  ;;  %v3392_v3 = vld [vmem:[%s5289_s24 + $0x150] sm:$0xff]  ;;  %v3381_v4 = vld [vmem:[%s5289_s24 + $0x100] sm:$0xff]  ;;  %v3391_v5 = vld [vmem:[%s5289_s24 + $0x148] sm:$0xff] }
  0x26   :  { %3723 = vmatprep.subr.mxu0 %v4242_v1  ;;  %3694 = vmatmul.mubr.msk.f32.gmra.mxu0 %vm90_vm2, %v74_v24  ;;  %v3390_v7 = vld [vmem:[%s5289_s24 + $0x140] sm:$0xff]  ;;  %v3406_v8 = vld [vmem:[%s5289_s24 + $0x1b8] sm:$0xff]  ;;  %v3405_v10 = vld [vmem:[%s5289_s24 + $0x1b0] sm:$0xff] }
  0x27   :  { %3724 = vmatpush3.msra.mxu0 %v3357_v21  ;;  %3731 = vmatprep.mubr.msk.f32.mxu0 %vm4243_vm1, %v4242_v1  ;;  %v3415_v11 = vld [vmem:[%s5289_s24 + $0x1f8] sm:$0xff]  ;;  %v3404_v12 = vld [vmem:[%s5289_s24 + $0x1a8] sm:$0xff]  ;;  %v3414_v13 = vld [vmem:[%s5289_s24 + $0x1f0] sm:$0xff] }
  0x28   :  { %3725 = vmatprep.subr.mxu0 %v4242_v1  ;;  %v3403_v14 = vld [vmem:[%s5289_s24 + $0x1a0] sm:$0xff]  ;;  %v3413_v15 = vld [vmem:[%s5289_s24 + $0x1e8] sm:$0xff]  ;;  %v3402_v16 = vld [vmem:[%s5289_s24 + $0x198] sm:$0xff] }
  0x29   :  { %3726 = vmatpush3.msra.mxu0 %v3356_v23  ;;  %v3412_v17 = vld [vmem:[%s5289_s24 + $0x1e0] sm:$0xff]  ;;  %v3401_v19 = vld [vmem:[%s5289_s24 + $0x190] sm:$0xff]  ;;  %v3411_v20 = vld [vmem:[%s5289_s24 + $0x1d8] sm:$0xff] }
  0x2a   :  { %3727 = vmatprep.subr.mxu0 %v4242_v1  ;;  %v3400_v21 = vld [vmem:[%s5289_s24 + $0x188] sm:$0xff]  ;;  %v3410_v22 = vld [vmem:[%s5289_s24 + $0x1d0] sm:$0xff]  ;;  %v3399_v24 = vld [vmem:[%s5289_s24 + $0x180] sm:$0xff] }
  0x2b   :  { %3728 = vmatpush3.msra.mxu0 %v3355_v26  ;;  %v3409_v25 = vld [vmem:[%s5289_s24 + $0x1c8] sm:$0xff]  ;;  %v3408_v26 = vld [vmem:[%s5289_s24 + $0x1c0] sm:$0xff] }
  0x2c   :  { %3729 = vmatprep.subr.mxu0 %v4242_v1 }
  0x2d   :  { %3730 = vmatpush3.msra.mxu0 %v3354_v27 }
  0x2e   :  { %3753 = vmatprep.subr.mxu0 %v4242_v1 }
  0xde   :  { %v170_v29 = vpop.f32.mrf.mxu0 }
  0xdf   :  { %v171_v30 = vadd.f32 %v4492_v28, %v170_v29  ;;  %v3423_v29 = vld [vmem:[%s5289_s24 + $0x230] sm:$0xff] }
  0xe0   :  { %v3689_v31 = vpop.f32.mrf.mxu0 }
  0xe1   :  { %v4495_v32 = vmax.f32 %v171_v30, 0.0  ;;  %v3422_v30 = vld [vmem:[%s5289_s24 + $0x228] sm:$0xff]  ;;  %v3421_v31 = vld [vmem:[%s5289_s24 + $0x220] sm:$0xff] }
  0xe2   :  { %v4500_v34 = vpop.f32.mrf.mxu0 }
  0xe3   :  { %3713 = vmatmul.mubr.msk.f32.vlgmr.msra.gmra.mxu1 %vm194_vm3, %v4495_v32  ;;  %v278_v35 = vrot.slane %v4495_v32, 1  ;;  %v361_v51 = vrot.slane %v4495_v32, 2  ;;  %v444_v54 = vrot.slane %v4495_v32, 4  ;;  %v527_v6 = vrot.slane %v4495_v32, 5 }
  0xe4   :  { %3735 = vmatpush3.msra.mxu1 %v3370_v33  ;;  %3750 = vmatprep.mubr.msk.f32.mxu1 %vm4243_vm1, %v4242_v1  ;;  %v3692_v38 = vpop.f32.mrf.mxu0  ;;  %v610_v9 = vrot.slane %v4495_v32, 6  ;;  %v176_v18 = vadd.f32 %v4492_v28, %v4500_v34  ;;  %v3424_v28 = vld [vmem:[%s5289_s24 + $0x238] sm:$0xff]  ;;  %v3419_v33 = vld [vmem:[%s5289_s24 + $0x210] sm:$0xff] }
  0xe5   :  { %3736 = vmatprep.subr.mxu1 %v4242_v1  ;;  %3732 = vmatmul.mubr.msk.f32.vlgmr.msra.gmra.mxu0 %vm194_vm3, %v278_v35  ;;  %v3420_v32 = vld [vmem:[%s5289_s24 + $0x218] sm:$0xff]  ;;  %v3418_v35 = vld [vmem:[%s5289_s24 + $0x208] sm:$0xff] }
  0xe6   :  { %3737 = vmatpush3.msra.mxu1 %v3369_v36  ;;  %3754 = vmatpush3.msra.mxu0 %v3379_v37  ;;  %v184_v23 = vmax.f32 %v176_v18, 0.0  ;;  %v180_v34 = vpop.f32.mrf.mxu0  ;;  %v3417_v37 = vld [vmem:[%s5289_s24 + $0x200] sm:$0xff]  ;;  %v4244_v18 = vmov 2  }
  0xe7   :  { %3738 = vmatprep.subr.mxu1 %v4242_v1  ;;  %3755 = vmatprep.subr.mxu0 %v4242_v1 }
  0xe8   :  { %3739 = vmatpush3.msra.mxu1 %v3368_v39  ;;  %3756 = vmatpush3.msra.mxu0 %v3378_v40  ;;  %v776_v27 = vrot.slane %v184_v23, 1  ;;  %v3695_v36 = vpop.f32.mrf.mxu0  ;;  %v859_v38 = vrot.slane %v184_v23, 2  ;;  %v935_v39 = vld [vmem:[%s5261_s7 + $0x8] sm:$0xff] }
  0xe9   :  { %3740 = vmatprep.subr.mxu1 %v4242_v1  ;;  %3757 = vmatprep.subr.mxu0 %v4242_v1  ;;  %v1013_v40 = vld [vmem:[%s5263_s9 + $0x8] sm:$0xff] }
  0xea   :  { %3741 = vmatpush3.msra.mxu1 %v3367_v41  ;;  %3758 = vmatpush3.msra.mxu0 %v3377_v42  ;;  %v934_v41 = vld [vmem:[%s5261_s7] sm:$0xff] }
  0xeb   :  { %3742 = vmatprep.subr.mxu1 %v4242_v1  ;;  %3759 = vmatprep.subr.mxu0 %v4242_v1  ;;  %v1012_v42 = vld [vmem:[%s5263_s9] sm:$0xff] }
  0xec   :  { %3743 = vmatpush3.msra.mxu1 %v3366_v43  ;;  %3760 = vmatpush3.msra.mxu0 %v3376_v44 }
  0xed   :  { %3744 = vmatprep.subr.mxu1 %v4242_v1  ;;  %3761 = vmatprep.subr.mxu0 %v4242_v1 }
  0xee   :  { %3745 = vmatpush3.msra.mxu1 %v3365_v45  ;;  %3762 = vmatpush3.msra.mxu0 %v3375_v46 }
  0xef   :  { %3746 = vmatprep.subr.mxu1 %v4242_v1  ;;  %3763 = vmatprep.subr.mxu0 %v4242_v1 }
  0xf0   :  { %3747 = vmatpush3.msra.mxu1 %v3364_v47  ;;  %3764 = vmatpush3.msra.mxu0 %v3374_v48 }
  0xf1   :  { %3748 = vmatprep.subr.mxu1 %v4242_v1  ;;  %3765 = vmatprep.subr.mxu0 %v4242_v1 }
  0xf2   :  { %3749 = vmatpush3.msra.mxu1 %v3363_v49  ;;  %3766 = vmatpush3.msra.mxu0 %v3373_v50 }
  0xf3   :  { %3751 = vmatmul.mubr.msk.f32.vlgmr.msra.gmra.mxu1 %vm194_vm3, %v361_v51  ;;  %3767 = vmatprep.subr.mxu0 %v4242_v1 }
  0xf4   :  { %3772 = vmatprep.subr.mxu1 %v4242_v1  ;;  %3768 = vmatpush3.msra.mxu0 %v3372_v52 }
  0xf5   :  { %3769 = vmatprep.mubr.msk.f32.mxu0 %vm4243_vm1, %v4242_v1  ;;  %3773 = vmatpush3.msra.mxu1 %v3388_v53 }
  0xf6   :  { %3770 = vmatmul.mubr.msk.f32.vlgmr.msra.gmra.mxu0 %vm194_vm3, %v444_v54  ;;  %3774 = vmatprep.subr.mxu1 %v4242_v1 }
  0xf7   :  { %3791 = vmatprep.subr.mxu0 %v4242_v1  ;;  %3775 = vmatpush3.msra.mxu1 %v3387_v55  ;;  %v185_v55 = vld [vmem:[%s5292_s2] sm:$0x1] }
  0xf8   :  { %3792 = vmatpush3.msra.mxu0 %v3397_v56  ;;  %3776 = vmatprep.subr.mxu1 %v4242_v1 }
  0xf9   :  { %3793 = vmatprep.subr.mxu0 %v4242_v1  ;;  %3777 = vmatpush3.msra.mxu1 %v3386_v57 }
  0xfa   :  { %3794 = vmatpush3.msra.mxu0 %v3396_v58  ;;  %3778 = vmatprep.subr.mxu1 %v4242_v1 }
  0xfb   :  { %3795 = vmatprep.subr.mxu0 %v4242_v1  ;;  %3779 = vmatpush3.msra.mxu1 %v3385_v59 }
  0xfc   :  { %3796 = vmatpush3.msra.mxu0 %v3395_v60  ;;  %3780 = vmatprep.subr.mxu1 %v4242_v1 }
  0xfd   :  { %3797 = vmatprep.subr.mxu0 %v4242_v1  ;;  %3781 = vmatpush3.msra.mxu1 %v3384_v61 }
  0xfe   :  { %3798 = vmatpush3.msra.mxu0 %v3394_v62  ;;  %3782 = vmatprep.subr.mxu1 %v4242_v1 }
  0xff   :  { %3799 = vmatprep.subr.mxu0 %v4242_v1  ;;  %3783 = vmatpush3.msra.mxu1 %v3383_v63 }
 0x100   :  { %3800 = vmatpush3.msra.mxu0 %v3393_v0  ;;  %3784 = vmatprep.subr.mxu1 %v4242_v1 }
 0x101   :  { %3801 = vmatprep.subr.mxu0 %v4242_v1  ;;  %3785 = vmatpush3.msra.mxu1 %v3382_v2 }
 0x102   :  { %3802 = vmatpush3.msra.mxu0 %v3392_v3  ;;  %3786 = vmatprep.subr.mxu1 %v4242_v1 }
 0x103   :  { %3803 = vmatprep.subr.mxu0 %v4242_v1  ;;  %3787 = vmatpush3.msra.mxu1 %v3381_v4 }
 0x104   :  { %3788 = vmatprep.mubr.msk.f32.mxu1 %vm4243_vm1, %v4242_v1  ;;  %3804 = vmatpush3.msra.mxu0 %v3391_v5 }
 0x105   :  { %3789 = vmatmul.mubr.msk.f32.vlgmr.msra.gmra.mxu1 %vm194_vm3, %v527_v6  ;;  %3805 = vmatprep.subr.mxu0 %v4242_v1 }
 0x106   :  { %3810 = vmatprep.subr.mxu1 %v4242_v1  ;;  %3806 = vmatpush3.msra.mxu0 %v3390_v7 }
 0x107   :  { %3807 = vmatprep.mubr.msk.f32.mxu0 %vm4243_vm1, %v4242_v1  ;;  %3811 = vmatpush3.msra.mxu1 %v3406_v8 }
 0x108   :  { %3808 = vmatmul.mubr.msk.f32.vlgmr.msra.gmra.mxu0 %vm194_vm3, %v610_v9  ;;  %3812 = vmatprep.subr.mxu1 %v4242_v1  ;;  %v1156_v9 = vld [vmem:[%s5267_s13 + $0x18] sm:$0xf] }
 0x109   :  { %3829 = vmatprep.subr.mxu0 %v4242_v1  ;;  %3813 = vmatpush3.msra.mxu1 %v3405_v10  ;;  %v1249_v10 = vld [vmem:[%s5269_s15 + $0x18] sm:$0xff] }
 0x10a   :  { %3830 = vmatpush3.msra.mxu0 %v3415_v11  ;;  %3814 = vmatprep.subr.mxu1 %v4242_v1  ;;  %v1155_v11 = vld [vmem:[%s5267_s13 + $0x10] sm:$0xff] }
 0x10b   :  { %3831 = vmatprep.subr.mxu0 %v4242_v1  ;;  %3815 = vmatpush3.msra.mxu1 %v3404_v12  ;;  %v1248_v12 = vld [vmem:[%s5269_s15 + $0x10] sm:$0xff] }
 0x10c   :  { %3832 = vmatpush3.msra.mxu0 %v3414_v13  ;;  %3816 = vmatprep.subr.mxu1 %v4242_v1  ;;  %v1154_v13 = vld [vmem:[%s5267_s13 + $0x8] sm:$0xff] }
 0x10d   :  { %3833 = vmatprep.subr.mxu0 %v4242_v1  ;;  %3817 = vmatpush3.msra.mxu1 %v3403_v14  ;;  %v1247_v14 = vld [vmem:[%s5269_s15 + $0x8] sm:$0xff] }
 0x10e   :  { %3834 = vmatpush3.msra.mxu0 %v3413_v15  ;;  %3818 = vmatprep.subr.mxu1 %v4242_v1  ;;  %v1153_v15 = vld [vmem:[%s5267_s13] sm:$0xff] }
 0x10f   :  { %3835 = vmatprep.subr.mxu0 %v4242_v1  ;;  %3819 = vmatpush3.msra.mxu1 %v3402_v16  ;;  %v1246_v16 = vld [vmem:[%s5269_s15] sm:$0xff] }
 0x110   :  { %3836 = vmatpush3.msra.mxu0 %v3412_v17  ;;  %3820 = vmatprep.subr.mxu1 %v4242_v1  ;;  %v1087_v17 = vld [vmem:[%s5293_s3] sm:$0x3]  ;;  %s4250_s3 = smov 32  }
 0x111   :  { %3837 = vmatprep.subr.mxu0 %v4242_v1  ;;  %3821 = vmatpush3.msra.mxu1 %v3401_v19  ;;  %v4245_v19 = vmov 0  }
 0x112   :  { %3838 = vmatpush3.msra.mxu0 %v3411_v20  ;;  %3822 = vmatprep.subr.mxu1 %v4242_v1  ;;  %v4246_v20 = vmov 3  }
 0x113   :  { %3839 = vmatprep.subr.mxu0 %v4242_v1  ;;  %3823 = vmatpush3.msra.mxu1 %v3400_v21  ;;  %v4247_v21 = vmov 1  }
 0x114   :  { %3840 = vmatpush3.msra.mxu0 %v3410_v22  ;;  %3824 = vmatprep.subr.mxu1 %v4242_v1  ;;  %v1088_v22 = vld [vmem:[%s5294_s28] sm:$0xff] }
 0x115   :  { %3841 = vmatprep.subr.mxu0 %v4242_v1  ;;  %3825 = vmatpush3.msra.mxu1 %v3399_v24  ;;  %v1014_v24 = vld [vmem:[%s5264_s10] sm:$0x1] }
 0x116   :  { %3826 = vmatprep.mubr.msk.f32.mxu1 %vm4243_vm1, %v4242_v1  ;;  %3842 = vmatpush3.msra.mxu0 %v3409_v25 }
 0x117   :  { %3827 = vmatmul.mubr.msk.f32.vlgmr.msra.gmra.mxu1 %vm194_vm3, %v184_v23  ;;  %3843 = vmatprep.subr.mxu0 %v4242_v1  ;;  %v936_v23 = vld [vmem:[%s5262_s8] sm:$0x1] }
 0x118   :  { %3848 = vmatprep.subr.mxu1 %v4242_v1  ;;  %3844 = vmatpush3.msra.mxu0 %v3408_v26 }
 0x119   :  { %3845 = vmatprep.mubr.msk.f32.mxu0 %vm4243_vm1, %v4242_v1  ;;  %3849 = vmatpush3.msra.mxu1 %v3424_v28 }
 0x11a   :  { %3846 = vmatmul.mubr.msk.f32.vlgmr.msra.gmra.mxu0 %vm194_vm3, %v776_v27  ;;  %3850 = vmatprep.subr.mxu1 %v4242_v1 }
 0x11b   :  { %3851 = vmatpush3.msra.mxu1 %v3423_v29  ;;  %3864 = vmatprep.mubr.msk.f32.mxu1 %vm4243_vm1, %v4242_v1 }
 0x11c   :  { %3852 = vmatprep.subr.mxu1 %v4242_v1  ;;  %3867 = vmatprep.subr.mxu0 %v4242_v1 }
 0x11d   :  { %3853 = vmatpush3.msra.mxu1 %v3422_v30  ;;  %3871 = vmatprep.mubr.msk.f32.mxu0 %vm4243_vm1, %v4242_v1 }
 0x11e   :  { %3854 = vmatprep.subr.mxu1 %v4242_v1  ;;  %3868 = vmatpush3.msra.mxu0 %v935_v39 }
 0x11f   :  { %3855 = vmatpush3.msra.mxu1 %v3421_v31  ;;  %3869 = vmatprep.subr.mxu0 %v4242_v1 }
 0x120   :  { %3856 = vmatprep.subr.mxu1 %v4242_v1  ;;  %3870 = vmatpush3.msra.mxu0 %v934_v41 }
 0x121   :  { %3857 = vmatpush3.msra.mxu1 %v3420_v32  ;;  %3881 = vmatprep.subr.mxu0 %v4242_v1 }
 0x122   :  { %3858 = vmatprep.subr.mxu1 %v4242_v1  ;;  %4137 = vset.pattern.permute.xlu1 %v4244_v18  ;;  %v4872_v18 = vld [vmem:[%s5272_s18 + $0x10] sm:$0xff] }
 0x123   :  { %3859 = vmatpush3.msra.mxu1 %v3419_v33  ;;  %4135 = vset.pattern.permute.xlu0 %v4245_v19  ;;  %v1096_v33 = vlaneseq }
 0x124   :  { %3860 = vmatprep.subr.mxu1 %v4242_v1  ;;  %1112 = vperm.xlu1 %4137, %v1087_v17  }
 0x125   :  { %3861 = vmatpush3.msra.mxu1 %v3418_v35  ;;  %1093 = vperm.xlu0 %4135, %v1087_v17   ;;  %v1097_v34 = vshrl.u32 %v1096_v33, 7  ;;  %v4928_v33 = vld [vmem:[%s5270_s16 + $0x18] sm:$0xff] }
 0x126   :  { %3862 = vmatprep.subr.mxu1 %v4242_v1 }
 0x127   :  { %3863 = vmatpush3.msra.mxu1 %v3417_v37  ;;  %v4833_v36 = vsub.s32 0, %v1097_v34  ;;  %v4835_v37 = vsub.s32 1, %v1097_v34 }
 0x128   :  { %3865 = vmatmul.mubr.msk.f32.vlgmr.msra.gmra.mxu1 %vm194_vm3, %v859_v38  ;;  %3874 = vmatprep.subr.mxu1 %v4242_v1  ;;  %v1090_v38 = vld [vmem:[%s5265_s11] sm:$0xf] }
 0x129   :  { %3878 = vmatprep.mubr.msk.f32.mxu1 %vm4243_vm1, %v4242_v1  ;;  %3875 = vmatpush3.msra.mxu1 %v1013_v40  ;;  %v1117_v40 = vsub.s32 2, %v1097_v34  ;;  %v1099_v41 = vrot.slane %v1090_v38, %v4833_v36 }
 0x12a   :  { %3876 = vmatprep.subr.mxu1 %v4242_v1  ;;  %4138 = vset.pattern.permute.xlu1 %v4246_v20  ;;  %v4886_v20 = vld [vmem:[%s5272_s18] sm:$0xff] }
 0x12b   :  { %3877 = vmatpush3.msra.mxu1 %v1012_v42  ;;  %4136 = vset.pattern.permute.xlu0 %v4247_v21  ;;  %v1108_v42 = vrot.slane %v1090_v38, %v4835_v37 }
 0x12c   :  { %3892 = vmatprep.subr.mxu1 %v4242_v1  ;;  %1122 = vperm.xlu1 %4138, %v1087_v17  }
 0x12d   :  { %1102 = vperm.xlu0 %4136, %v1087_v17   ;;  %v4867_v17 = vld [vmem:[%s5272_s18 + $0x18] sm:$0xff] }
 0x130   :  { %4139 = vset.pattern.permute.xlu1 %v4245_v19  ;;  %v4879_v19 = vld [vmem:[%s5272_s18 + $0x8] sm:$0xff] }
 0x131   :  { %1143 = vperm.xlu0 %4136, %v1088_v22   ;;  %1134 = vperm.xlu1 %4139, %v1088_v22  }
 0x19f   :  { %v1113_v39 = vpop.permute.xlu1 %1112 }
 0x1a0   :  { %v1094_v35 = vpop.permute.xlu0 %1093 }
 0x1a3   :  { %v264_v43 = vpop.f32.mrf.mxu1 }
 0x1a4   :  { %v268_v56 = vadd.f32 %v264_v43, %v185_v55 }
 0x1a5   :  { %v3714_v44 = vpop.f32.mrf.mxu1  ;;  %v347_v45 = vpop.f32.mrf.mxu0 }
 0x1a6   :  { %v351_v57 = vadd.f32 %v347_v45, %v268_v56  ;;  %v1127_v44 = vsub.s32 3, %v1097_v34  ;;  %v4934_v34 = vld [vmem:[%s5270_s16 + $0x10] sm:$0xff] }
 0x1a7   :  { %v3733_v46 = vpop.f32.mrf.mxu0  ;;  %v1123_v45 = vpop.permute.xlu1 %1122 }
 0x1a8   :  { %v1103_v43 = vpop.permute.xlu0 %1102  ;;  %v1118_v46 = vrot.slane %v1090_v38, %v1117_v40  ;;  %v4969_v40 = vld [vmem:[%s5275_s21] ss:$0 sm:$0xff] }
 0x1ac   :  { %v4847_v55 = vpop.permute.xlu1 %1134  ;;  %v4849_v56 = vpop.permute.xlu0 %1143 }
 0x1b3   :  { %v430_v47 = vpop.f32.mrf.mxu1 }
 0x1b4   :  { %v434_v58 = vadd.f32 %v430_v47, %v351_v57  ;;  %v1100_v47 = vmul.f32 %v1099_v41, %v1094_v35  ;;  %v4943_v35 = vld [vmem:[%s5270_s16 + $0x8] sm:$0xff] }
 0x1b5   :  { %v3752_v48 = vpop.f32.mrf.mxu1 }
 0x1b6   :  { %v513_v49 = vpop.f32.mrf.mxu0  ;;  %v1109_v48 = vmul.f32 %v1108_v42, %v1103_v43 }
 0x1b7   :  { %v517_v62 = vadd.f32 %v513_v49, %v434_v58  ;;  %v1131_v49 = vld [vmem:[%s5266_s12] sm:$0x3] }
 0x1b8   :  { %v3771_v50 = vpop.f32.mrf.mxu0 }
 0x1b9   :  { %v1128_v50 = vrot.slane %v1090_v38, %v1127_v44  ;;  %v4950_v38 = vld [vmem:[%s5270_s16] sm:$0xff] }
 0x1bb   :  { %v1129_v57 = vmul.f32 %v1128_v50, %v1123_v45 }
 0x1c5   :  { %v596_v51 = vpop.f32.mrf.mxu1 }
 0x1c6   :  { %v600_v0 = vadd.f32 %v596_v51, %v517_v62  ;;  %v1119_v51 = vmul.f32 %v1118_v46, %v1113_v39  ;;  %v1324_v39 = vld [vmem:[%s5268_s14] sm:$0x3] }
 0x1c7   :  { %v3790_v52 = vpop.f32.mrf.mxu1  ;;  %v4972_v41 = vrot.slane %v1324_v39, %v4833_v36  ;;  %v4975_v42 = vrot.slane %v1324_v39, %v4835_v37 }
 0x1c8   :  { %v679_v53 = vpop.f32.mrf.mxu0  ;;  %v1110_v52 = vadd.f32 %v1109_v48, %v1100_v47 }
 0x1c9   :  { %v683_v2 = vadd.f32 %v679_v53, %v600_v0  ;;  %v1140_v53 = vrot.slane %v1131_v49, %v4833_v36  ;;  %v4856_v0 = vld [vmem:[%s5271_s17] sm:$0x1]  ;;  %v1334_v47 = vmul.f32 %v4972_v41, %v4847_v55  ;;  %v1344_v48 = vmul.f32 %v4975_v42, %v4849_v56 }
 0x1ca   :  { %v3809_v54 = vpop.f32.mrf.mxu0  ;;  %v1120_v58 = vadd.f32 %v1119_v51, %v1110_v52 }
 0x1cb   :  { %v1149_v54 = vrot.slane %v1131_v49, %v4835_v37  ;;  %v1346_v50 = vadd.f32 %v1344_v48, %v1334_v47 }
 0x1cc   :  { %v1130_v62 = vadd.f32 %v1129_v57, %v1120_v58 }
 0x1d7   :  { %v762_v59 = vpop.f32.mrf.mxu1 }
 0x1d8   :  { %v766_v3 = vadd.f32 %v762_v59, %v683_v2  ;;  %v1141_v59 = vmul.f32 %v1140_v53, %v4847_v55 }
 0x1d9   :  { %v3828_v60 = vpop.f32.mrf.mxu1 }
 0x1da   :  { %v845_v61 = vpop.f32.mrf.mxu0  ;;  %v1150_v60 = vmul.f32 %v1149_v54, %v4849_v56 }
 0x1db   :  { %v849_v4 = vadd.f32 %v845_v61, %v766_v3 }
 0x1dc   :  { %v3847_v63 = vpop.f32.mrf.mxu0  ;;  %v1151_v61 = vadd.f32 %v1150_v60, %v1141_v59 }
 0x1de   :  { %v1152_v3 = vadd.f32 %v1151_v61, %v1130_v62 }
 0x1e8   :  { %v928_v5 = vpop.f32.mrf.mxu1 }
 0x1e9   :  { %v932_v6 = vadd.f32 %v928_v5, %v849_v4  ;;  %v1243_v5 = vrot.slane %v4856_v0, %v4833_v36 }
 0x1ea   :  { %v3866_v7 = vpop.f32.mrf.mxu1 }
 0x1eb   :  { %v933_v8 = vmax.f32 %v932_v6, 0.0 }
 0x1ed   :  { %3872 = vmatmul.mubr.msk.f32.vlgmr.msra.gmra.mxu0 %vm937_vm4, %v933_v8  ;;  %3879 = vmatmul.mubr.msk.f32.vlgmr.msra.gmra.mxu1 %vm937_vm4, %v933_v8 }
 0x1ee   :  { %3882 = vmatpush3.msk.msra.mxu0 %vm100_vm0, %v1156_v9  ;;  %3893 = vmatpush3.msra.mxu1 %v1249_v10 }
 0x1ef   :  { %3883 = vmatprep.subr.mxu0 %v4242_v1  ;;  %3894 = vmatprep.subr.mxu1 %v4242_v1 }
 0x1f0   :  { %3889 = vmatprep.mubr.msk.f32.mxu0 %vm4243_vm1, %v4242_v1  ;;  %3900 = vmatprep.mubr.msk.f32.mxu1 %vm4243_vm1, %v4242_v1 }
 0x1f1   :  { %3884 = vmatpush3.msra.mxu0 %v1155_v11  ;;  %3895 = vmatpush3.msra.mxu1 %v1248_v12 }
 0x1f2   :  { %3885 = vmatprep.subr.mxu0 %v4242_v1  ;;  %3896 = vmatprep.subr.mxu1 %v4242_v1 }
 0x1f3   :  { %3886 = vmatpush3.msra.mxu0 %v1154_v13  ;;  %3897 = vmatpush3.msra.mxu1 %v1247_v14 }
 0x1f4   :  { %3887 = vmatprep.subr.mxu0 %v4242_v1  ;;  %3898 = vmatprep.subr.mxu1 %v4242_v1 }
 0x1f5   :  { %3888 = vmatpush3.msra.mxu0 %v1153_v15  ;;  %3899 = vmatpush3.msra.mxu1 %v1246_v16 }
 0x1f6   :  { %3903 = vmatprep.subr.mxu0 %v4242_v1  ;;  %3914 = vmatprep.subr.mxu1 %v4242_v1 }
 0x2ad   :  { %v1007_v25 = vpop.f32.mrf.mxu0  ;;  %v1081_v26 = vpop.f32.mrf.mxu1 }
 0x2ae   :  { %v1008_v27 = vadd.f32 %v1007_v25, %v936_v23  ;;  %v1082_v28 = vadd.f32 %v1081_v26, %v1014_v24  ;;  %v4908_v26 = vld [vmem:[%s5274_s20 + $0x8] sm:$0xff] }
 0x2af   :  { %v3873_v29 = vpop.f32.mrf.mxu0  ;;  %v3880_v30 = vpop.f32.mrf.mxu1 }
 0x2b0   :  { %v1011_v31 = vmax.f32 %v1008_v27, 0.0  ;;  %v1085_v32 = vmax.f32 %v1082_v28, 0.0  ;;  %v4915_v27 = vld [vmem:[%s5274_s20] sm:$0xff] }
 0x2b1   :  { %v4922_v28 = vld [vmem:[%s5273_s19] ss:$0 sm:$0xff] }
 0x2b2   :  { %3890 = vmatmul.mubr.msk.f32.vlgmr.msra.gmra.mxu0 %vm1157_vm5, %v1011_v31  ;;  %3901 = vmatmul.mubr.msk.f32.vlgmr.msra.gmra.mxu1 %vm1250_vm6, %v1085_v32 }
 0x2b3   :  { %3911 = vmatprep.mubr.msk.f32.mxu0 %vm4243_vm1, %v4242_v1  ;;  %3918 = vmatprep.mubr.msk.f32.mxu1 %vm4243_vm1, %v4242_v1 }
 0x2b4   :  { %3904 = vmatpush3.msra.mxu0 %v4867_v17  ;;  %3915 = vmatpush3.msra.mxu1 %v4908_v26 }
 0x2b5   :  { %3905 = vmatprep.subr.mxu0 %v4242_v1  ;;  %3916 = vmatprep.subr.mxu1 %v4242_v1 }
 0x2b6   :  { %3906 = vmatpush3.msra.mxu0 %v4872_v18  ;;  %3917 = vmatpush3.msra.mxu1 %v4915_v27 }
 0x2b7   :  { %3907 = vmatprep.subr.mxu0 %v4242_v1  ;;  %3921 = vmatprep.subr.mxu1 %v4242_v1 }
 0x2b8   :  { %3908 = vmatpush3.msra.mxu0 %v4879_v19 }
 0x2b9   :  { %3909 = vmatprep.subr.mxu0 %v4242_v1 }
 0x2ba   :  { %3910 = vmatpush3.msra.mxu0 %v4886_v20 }
 0x2bb   :  { %3932 = vmatprep.subr.mxu0 %v4242_v1 }
 0x372   :  { %v1230_v63 = vpop.f32.mrf.mxu0  ;;  %v4858_v2 = vpop.f32.mrf.mxu1 }
 0x373   :  { %v1237_v4 = vrot.slane %v1230_v63, %v4833_v36  ;;  %v1321_v44 = vadd.f32 %v4858_v2, %v4856_v0 }
 0x374   :  { %v3891_v6 = vpop.f32.mrf.mxu0  ;;  %v3902_v7 = vpop.f32.mrf.mxu1 }
 0x375   :  { %v1238_v8 = vadd.f32 %v1237_v4, %v1152_v3  ;;  %v4985_v49 = vrot.slane %v1321_v44, %v4833_v36 }
 0x377   :  { %v1245_v9 = vadd.f32 %v1243_v5, %v1238_v8  ;;  %v4988_v51 = vadd.f32 %v4985_v49, %v1346_v50 }
 0x379   :  { %4140 = vtanh.f32 %v1245_v9  ;;  %v3431_v11 = vmul.f32 -1.442695, %v1245_v9 }
 0x37b   :  { %4142 = vpow2.f32 %v3431_v11 }
 0x386   :  { %v4141_v10 = vpop.eup %4140 }
 0x387   :  { %1368 = vrot.lane.b32.xlu1 %v4141_v10, %s4248_s5 }
 0x388   :  { %v4143_v12 = vpop.eup %4142 }
 0x389   :  { %v1363_v13 = vadd.f32 1.0, %v4143_v12 }
 0x38b   :  { %4144 = vrcp.f32 %v1363_v13 }
 0x398   :  { %v4145_v14 = vpop.eup %4144 }
 0x3f9   :  { %v1369_v15 = vpop.permute.xlu1 %1368 }
 0x3fa   :  { %v1371_v16 = vmul.f32 %v4145_v14, %v1369_v15 }
 0x3fc   :  { %4146 = vtanh.f32 %v1371_v16  ;;  %v1630_v24 = vrot.slane %v1371_v16, 6 }
 0x409   :  { %v4147_v21 = vpop.eup %4146 }
 0x40a   :  { %1374 = vrot.lane.b32.xlu0 %v4147_v21, %s4249_s27 }
 0x47c   :  { %v1375_v22 = vpop.permute.xlu0 %1374 }
 0x47d   :  { %v1377_v23 = vmul.f32 %v4145_v14, %v1375_v22 }
 0x47f   :  { %1385 = vrot.lane.b32.xlu1 %v1377_v23, %s4250_s3 }
 0x483   :  { %1631 = vrot.lane.b32.xlu1 %v1630_v24, %s4250_s3 }
 0x4f1   :  { %v1386_v25 = vpop.permute.xlu1 %1385 }
 0x4f2   :  { %3912 = vmatmul.mubr.msk.f32.vlgmr.msra.gmra.mxu0 %vm1250_vm6, %v1386_v25 }
 0x4f3   :  { %3933 = vmatpush3.msra.mxu0 %v4867_v17  ;;  %3940 = vmatprep.mubr.msk.f32.mxu0 %vm4243_vm1, %v4242_v1 }
 0x4f4   :  { %3934 = vmatprep.subr.mxu0 %v4242_v1 }
 0x4f5   :  { %3935 = vmatpush3.msra.mxu0 %v4872_v18  ;;  %v1632_v62 = vpop.permute.xlu1 %1631 }
 0x4f6   :  { %3936 = vmatprep.subr.mxu0 %v4242_v1 }
 0x4f7   :  { %3937 = vmatpush3.msra.mxu0 %v4879_v19 }
 0x4f8   :  { %3938 = vmatprep.subr.mxu0 %v4242_v1 }
 0x4f9   :  { %3939 = vmatpush3.msra.mxu0 %v4886_v20 }
 0x4fa   :  { %3950 = vmatprep.subr.mxu0 %v4242_v1 }
 0x5b2   :  { %v1455_v29 = vpop.f32.mrf.mxu0 }
 0x5b3   :  { %v1456_v30 = vadd.f32 %v4922_v28, %v1455_v29 }
 0x5b4   :  { %v3913_v31 = vpop.f32.mrf.mxu0 }
 0x5b5   :  { %v1459_v32 = vmax.f32 %v1456_v30, 0.0 }
 0x5b7   :  { %3919 = vmatmul.mubr.msk.f32.vlgmr.msra.gmra.mxu1 %vm937_vm4, %v1459_v32 }
 0x5b8   :  { %3922 = vmatpush3.msra.mxu1 %v4928_v33  ;;  %3929 = vmatprep.mubr.msk.f32.mxu1 %vm4243_vm1, %v4242_v1 }
 0x5b9   :  { %3923 = vmatprep.subr.mxu1 %v4242_v1 }
 0x5ba   :  { %3924 = vmatpush3.msra.mxu1 %v4934_v34 }
 0x5bb   :  { %3925 = vmatprep.subr.mxu1 %v4242_v1 }
 0x5bc   :  { %3926 = vmatpush3.msra.mxu1 %v4943_v35 }
 0x5bd   :  { %3927 = vmatprep.subr.mxu1 %v4242_v1 }
 0x5be   :  { %3928 = vmatpush3.msra.mxu1 %v4950_v38 }
 0x5bf   :  { %3930 = vmatmul.mubr.msk.f32.vlgmr.msra.gmra.mxu1 %vm1250_vm6, %v1386_v25  ;;  %3943 = vmatprep.subr.mxu1 %v4242_v1 }
 0x5c0   :  { %3944 = vmatpush3.msra.mxu1 %v4908_v26  ;;  %3947 = vmatprep.mubr.msk.f32.mxu1 %vm4243_vm1, %v4242_v1 }
 0x5c1   :  { %3945 = vmatprep.subr.mxu1 %v4242_v1 }
 0x5c2   :  { %3946 = vmatpush3.msra.mxu1 %v4915_v27 }
 0x5c3   :  { %3961 = vmatprep.subr.mxu1 %v4242_v1 }
 0x677   :  { %v1535_v43 = vpop.f32.mrf.mxu1 }
 0x678   :  { %v1536_v45 = vadd.f32 %v4969_v40, %v1535_v43 }
 0x679   :  { %v3920_v46 = vpop.f32.mrf.mxu1 }
 0x67a   :  { %4148 = vtanh.f32 %v1536_v45 }
 0x67f   :  { %v1614_v37 = vpop.f32.mrf.mxu1 }
 0x680   :  { %v1619_v52 = vrot.slane %v1614_v37, 6 }
 0x681   :  { %v3931_v53 = vpop.f32.mrf.mxu1 }
 0x682   :  { %v1621_v54 = vadd.f32 %v1619_v52, %v4988_v51 }
 0x684   :  { %4150 = vtanh.f32 %v1621_v54  ;;  %v3437_v56 = vmul.f32 -1.442695, %v1621_v54 }
 0x686   :  { %4152 = vpow2.f32 %v3437_v56 }
 0x687   :  { %v4149_v57 = vpop.eup %4148 }
 0x688   :  { %1542 = vst.msk [vmem:[#allocation2] sm:$0x3] %vm1541_vm7, %v4149_v57 }
 0x691   :  { %v4151_v55 = vpop.eup %4150 }
 0x692   :  { %1636 = vrot.lane.b32.xlu0 %v4151_v55, %s4248_s5 }
 0x693   :  { %v4153_v36 = vpop.eup %4152 }
 0x694   :  { %v1625_v58 = vadd.f32 1.0, %v4153_v36 }
 0x696   :  { %4154 = vrcp.f32 %v1625_v58 }
 0x6a3   :  { %v4155_v59 = vpop.eup %4154 }
 0x6a4   :  { %v1634_v63 = vmul.f32 %v4155_v59, %v1632_v62 }
 0x704   :  { %v1637_v60 = vpop.permute.xlu0 %1636 }
 0x705   :  { %v1639_v61 = vmul.f32 %v4155_v59, %v1637_v60 }
 0x707   :  { %1641 = vrot.lane.b32.xlu0 %v1639_v61, %s4250_s3 }
 0x779   :  { %v1642_v0 = vpop.permute.xlu0 %1641 }
 0x77a   :  { %v4994_v2 = vadd.f32 %v1642_v0, %v1634_v63 }
 0x77c   :  { %4156 = vtanh.f32 %v4994_v2  ;;  %v1887_v44 = vrot.slane %v4994_v2, 6 }
 0x789   :  { %v4157_v3 = vpop.eup %4156 }
 0x78a   :  { %1647 = vrot.lane.b32.xlu1 %v4157_v3, %s4248_s5 }
 0x7fc   :  { %v1648_v4 = vpop.permute.xlu1 %1647 }
 0x7fd   :  { %v1650_v5 = vmul.f32 %v4155_v59, %v1648_v4 }
 0x7ff   :  { %v1652_v6 = vrot.slane %v1650_v5, 2 }
 0x801   :  { %1653 = vrot.lane.b32.xlu0 %v1652_v6, %s4250_s3 }
 0x873   :  { %v1654_v7 = vpop.permute.xlu0 %1653 }
 0x874   :  { %3941 = vmatmul.mubr.msk.f32.vlgmr.msra.gmra.mxu0 %vm1250_vm6, %v1654_v7 }
 0x875   :  { %3951 = vmatpush3.msra.mxu0 %v4928_v33  ;;  %3958 = vmatprep.mubr.msk.f32.mxu0 %vm4243_vm1, %v4242_v1 }
 0x876   :  { %3952 = vmatprep.subr.mxu0 %v4242_v1 }
 0x877   :  { %3953 = vmatpush3.msra.mxu0 %v4934_v34 }
 0x878   :  { %3954 = vmatprep.subr.mxu0 %v4242_v1 }
 0x879   :  { %3955 = vmatpush3.msra.mxu0 %v4943_v35 }
 0x87a   :  { %3956 = vmatprep.subr.mxu0 %v4242_v1 }
 0x87b   :  { %3957 = vmatpush3.msra.mxu0 %v4950_v38 }
 0x87c   :  { %3959 = vmatmul.mubr.msk.f32.vlgmr.msra.gmra.mxu0 %vm1250_vm6, %v1654_v7  ;;  %3972 = vmatprep.subr.mxu0 %v4242_v1 }
 0x87d   :  { %3973 = vmatpush3.msra.mxu0 %v4908_v26  ;;  %3976 = vmatprep.mubr.msk.f32.mxu0 %vm4243_vm1, %v4242_v1 }
 0x87e   :  { %3974 = vmatprep.subr.mxu0 %v4242_v1 }
 0x87f   :  { %3975 = vmatpush3.msra.mxu0 %v4915_v27 }
 0x880   :  { %3990 = vmatprep.subr.mxu0 %v4242_v1 }
 0x934   :  { %v1723_v8 = vpop.f32.mrf.mxu0 }
 0x935   :  { %v1724_v9 = vadd.f32 %v4922_v28, %v1723_v8 }
 0x936   :  { %v3942_v10 = vpop.f32.mrf.mxu0 }
 0x937   :  { %v1727_v11 = vmax.f32 %v1724_v9, 0.0 }
 0x939   :  { %3948 = vmatmul.mubr.msk.f32.vlgmr.msra.gmra.mxu1 %vm937_vm4, %v1727_v11 }
 0x93a   :  { %3962 = vmatpush3.msra.mxu1 %v4867_v17  ;;  %3969 = vmatprep.mubr.msk.f32.mxu1 %vm4243_vm1, %v4242_v1 }
 0x93b   :  { %3963 = vmatprep.subr.mxu1 %v4242_v1 }
 0x93c   :  { %v1871_v12 = vpop.f32.mrf.mxu0  ;;  %3964 = vmatpush3.msra.mxu1 %v4872_v18 }
 0x93d   :  { %v1876_v13 = vrot.slane %v1871_v12, 4  ;;  %3965 = vmatprep.subr.mxu1 %v4242_v1 }
 0x93e   :  { %v3960_v14 = vpop.f32.mrf.mxu0  ;;  %3966 = vmatpush3.msra.mxu1 %v4879_v19 }
 0x93f   :  { %v1878_v15 = vadd.f32 %v1876_v13, %v4988_v51  ;;  %3967 = vmatprep.subr.mxu1 %v4242_v1  ;;  %v1089_v14 = vld [vmem:[%s5294_s28 + $0x8] sm:$0xff]  ;;  %s4251_s28 = smov [#allocation2]  }
 0x940   :  { %3968 = vmatpush3.msra.mxu1 %v4886_v20 }
 0x941   :  { %4158 = vtanh.f32 %v1878_v15  ;;  %3979 = vmatprep.subr.mxu1 %v4242_v1  ;;  %v3441_v21 = vmul.f32 -1.442695, %v1878_v15 }
 0x943   :  { %4160 = vpow2.f32 %v3441_v21 }
 0x94e   :  { %v4159_v16 = vpop.eup %4158 }
 0x94f   :  { %1891 = vrot.lane.b32.xlu1 %v4159_v16, %s4248_s5 }
 0x950   :  { %v4161_v22 = vpop.eup %4160 }
 0x951   :  { %v1882_v23 = vadd.f32 1.0, %v4161_v22 }
 0x953   :  { %4162 = vrcp.f32 %v1882_v23 }
 0x960   :  { %v4163_v24 = vpop.eup %4162 }
 0x961   :  { %v1889_v45 = vmul.f32 %v4163_v24, %v1887_v44 }
 0x9c1   :  { %v1892_v25 = vpop.permute.xlu1 %1891 }
 0x9c2   :  { %v1894_v29 = vmul.f32 %v4163_v24, %v1892_v25 }
 0x9c4   :  { %1896 = vrot.lane.b32.xlu0 %v1894_v29, %s4250_s3 }
 0x9f9   :  { %v1797_v30 = vpop.f32.mrf.mxu1 }
 0x9fa   :  { %v1798_v31 = vadd.f32 %v4969_v40, %v1797_v30 }
 0x9fb   :  { %v3949_v32 = vpop.f32.mrf.mxu1 }
 0x9fc   :  { %4164 = vtanh.f32 %v1798_v31 }
 0xa09   :  { %v4165_v39 = vpop.eup %4164 }
 0xa0a   :  { %v1802_v43 = vadd.f32 2.0, %v4165_v39 }
 0xa0c   :  { %1804 = vst.msk [vmem:[#allocation2 + $0x2] sm:$0x3] %vm1541_vm7, %v1802_v43 }
 0xa36   :  { %v1897_v46 = vpop.permute.xlu0 %1896 }
 0xa37   :  { %v5035_v47 = vadd.f32 %v1897_v46, %v1889_v45 }
 0xa39   :  { %4166 = vtanh.f32 %v5035_v47  ;;  %v2142_v9 = vrot.slane %v5035_v47, 6 }
 0xa46   :  { %v4167_v48 = vpop.eup %4166 }
 0xa47   :  { %1902 = vrot.lane.b32.xlu1 %v4167_v48, %s4248_s5 }
 0xab9   :  { %v1903_v50 = vpop.permute.xlu1 %1902 }
 0xaba   :  { %v1905_v37 = vmul.f32 %v4163_v24, %v1903_v50 }
 0xabc   :  { %v1907_v52 = vrot.slane %v1905_v37, 4 }
 0xabe   :  { %1908 = vrot.lane.b32.xlu0 %v1907_v52, %s4250_s3 }
 0xb30   :  { %v1909_v53 = vpop.permute.xlu0 %1908 }
 0xb31   :  { %3970 = vmatmul.mubr.msk.f32.vlgmr.msra.gmra.mxu1 %vm1250_vm6, %v1909_v53 }
 0xb32   :  { %3980 = vmatpush3.msra.mxu1 %v4928_v33  ;;  %3987 = vmatprep.mubr.msk.f32.mxu1 %vm4243_vm1, %v4242_v1 }
 0xb33   :  { %3981 = vmatprep.subr.mxu1 %v4242_v1 }
 0xb34   :  { %3982 = vmatpush3.msra.mxu1 %v4934_v34 }
 0xb35   :  { %3983 = vmatprep.subr.mxu1 %v4242_v1 }
 0xb36   :  { %3984 = vmatpush3.msra.mxu1 %v4943_v35 }
 0xb37   :  { %3985 = vmatprep.subr.mxu1 %v4242_v1 }
 0xb38   :  { %3986 = vmatpush3.msra.mxu1 %v4950_v38 }
 0xb39   :  { %3988 = vmatmul.mubr.msk.f32.vlgmr.msra.gmra.mxu1 %vm1250_vm6, %v1909_v53  ;;  %4001 = vmatprep.subr.mxu1 %v4242_v1 }
 0xb3a   :  { %4002 = vmatpush3.msra.mxu1 %v4908_v26  ;;  %4005 = vmatprep.mubr.msk.f32.mxu1 %vm4243_vm1, %v4242_v1 }
 0xb3b   :  { %4003 = vmatprep.subr.mxu1 %v4242_v1 }
 0xb3c   :  { %4004 = vmatpush3.msra.mxu1 %v4915_v27 }
 0xb3d   :  { %4019 = vmatprep.subr.mxu1 %v4242_v1 }
 0xbf1   :  { %v1978_v54 = vpop.f32.mrf.mxu1 }
 0xbf2   :  { %v1979_v57 = vadd.f32 %v4922_v28, %v1978_v54 }
 0xbf3   :  { %v3971_v55 = vpop.f32.mrf.mxu1 }
 0xbf4   :  { %v1982_v56 = vmax.f32 %v1979_v57, 0.0 }
 0xbf6   :  { %3977 = vmatmul.mubr.msk.f32.vlgmr.msra.gmra.mxu0 %vm937_vm4, %v1982_v56 }
 0xbf7   :  { %3991 = vmatpush3.msra.mxu0 %v4867_v17  ;;  %3998 = vmatprep.mubr.msk.f32.mxu0 %vm4243_vm1, %v4242_v1 }
 0xbf8   :  { %3992 = vmatprep.subr.mxu0 %v4242_v1 }
 0xbf9   :  { %v2126_v36 = vpop.f32.mrf.mxu1  ;;  %3993 = vmatpush3.msra.mxu0 %v4872_v18 }
 0xbfa   :  { %v2131_v58 = vrot.slane %v2126_v36, 2  ;;  %3994 = vmatprep.subr.mxu0 %v4242_v1 }
 0xbfb   :  { %v3989_v59 = vpop.f32.mrf.mxu1  ;;  %3995 = vmatpush3.msra.mxu0 %v4879_v19 }
 0xbfc   :  { %v2133_v60 = vadd.f32 %v2131_v58, %v4988_v51  ;;  %3996 = vmatprep.subr.mxu0 %v4242_v1 }
 0xbfd   :  { %3997 = vmatpush3.msra.mxu0 %v4886_v20 }
 0xbfe   :  { %4168 = vtanh.f32 %v2133_v60  ;;  %4008 = vmatprep.subr.mxu0 %v4242_v1  ;;  %v3445_v62 = vmul.f32 -1.442695, %v2133_v60 }
 0xc00   :  { %4170 = vpow2.f32 %v3445_v62 }
 0xc0b   :  { %v4169_v61 = vpop.eup %4168 }
 0xc0c   :  { %2146 = vrot.lane.b32.xlu1 %v4169_v61, %s4248_s5 }
 0xc0d   :  { %v4171_v63 = vpop.eup %4170 }
 0xc0e   :  { %v2137_v0 = vadd.f32 1.0, %v4171_v63 }
 0xc10   :  { %4172 = vrcp.f32 %v2137_v0 }
 0xc1d   :  { %v4173_v2 = vpop.eup %4172 }
 0xc1e   :  { %v2144_v10 = vmul.f32 %v4173_v2, %v2142_v9 }
 0xc7e   :  { %v2147_v3 = vpop.permute.xlu1 %2146 }
 0xc7f   :  { %v2149_v4 = vmul.f32 %v4173_v2, %v2147_v3 }
 0xc81   :  { %2151 = vrot.lane.b32.xlu0 %v2149_v4, %s4250_s3 }
 0xcb6   :  { %v2052_v51 = vpop.f32.mrf.mxu0 }
 0xcb7   :  { %v2053_v5 = vadd.f32 %v4969_v40, %v2052_v51 }
 0xcb8   :  { %v3978_v6 = vpop.f32.mrf.mxu0 }
 0xcb9   :  { %4174 = vtanh.f32 %v2053_v5 }
 0xcc6   :  { %v4175_v7 = vpop.eup %4174 }
 0xcc7   :  { %v2057_v8 = vadd.f32 4.0, %v4175_v7 }
 0xcc9   :  { %2059 = vst.msk [vmem:[#allocation2 + $0x4] sm:$0x3] %vm1541_vm7, %v2057_v8 }
 0xcf3   :  { %v2152_v11 = vpop.permute.xlu0 %2151 }
 0xcf4   :  { %v5076_v12 = vadd.f32 %v2152_v11, %v2144_v10 }
 0xcf6   :  { %4176 = vtanh.f32 %v5076_v12  ;;  %v2395_v36 = vrot.slane %v5076_v12, 6 }
 0xd03   :  { %v4177_v13 = vpop.eup %4176 }
 0xd04   :  { %2157 = vrot.lane.b32.xlu1 %v4177_v13, %s4248_s5 }
 0xd08   :  { %1327 = vperm.xlu1 %4139, %v1089_v14  }
 0xd76   :  { %v2158_v15 = vpop.permute.xlu1 %2157 }
 0xd77   :  { %v2160_v16 = vmul.f32 %v4173_v2, %v2158_v15 }
 0xd79   :  { %v2162_v21 = vrot.slane %v2160_v16, 6 }
 0xd7b   :  { %2163 = vrot.lane.b32.xlu0 %v2162_v21, %s4250_s3 }
 0xd7f   :  { %1337 = vperm.xlu0 %4136, %v1089_v14  }
 0xd83   :  { %v1328_v24 = vpop.permute.xlu1 %1327 }
 0xd84   :  { %v1335_v30 = vmul.f32 %v4972_v41, %v1328_v24 }
 0xded   :  { %v2164_v22 = vpop.permute.xlu0 %2163 }
 0xdee   :  { %3999 = vmatmul.mubr.msk.f32.vlgmr.msra.gmra.mxu0 %vm1250_vm6, %v2164_v22 }
 0xdef   :  { %4009 = vmatpush3.msra.mxu0 %v4928_v33  ;;  %4016 = vmatprep.mubr.msk.f32.mxu0 %vm4243_vm1, %v4242_v1 }
 0xdf0   :  { %4010 = vmatprep.subr.mxu0 %v4242_v1 }
 0xdf1   :  { %4011 = vmatpush3.msra.mxu0 %v4934_v34 }
 0xdf2   :  { %4012 = vmatprep.subr.mxu0 %v4242_v1 }
 0xdf3   :  { %4013 = vmatpush3.msra.mxu0 %v4943_v35 }
 0xdf4   :  { %4014 = vmatprep.subr.mxu0 %v4242_v1 }
 0xdf5   :  { %4015 = vmatpush3.msra.mxu0 %v4950_v38 }
 0xdf6   :  { %4017 = vmatmul.mubr.msk.f32.vlgmr.msra.gmra.mxu0 %vm1250_vm6, %v2164_v22  ;;  %4030 = vmatprep.subr.mxu0 %v4242_v1 }
 0xdf7   :  { %4031 = vmatpush3.msra.mxu0 %v4908_v26  ;;  %4034 = vmatprep.mubr.msk.f32.mxu0 %vm4243_vm1, %v4242_v1 }
 0xdf8   :  { %4032 = vmatprep.subr.mxu0 %v4242_v1 }
 0xdf9   :  { %4033 = vmatpush3.msra.mxu0 %v4915_v27 }
 0xdfa   :  { %4048 = vmatprep.subr.mxu0 %v4242_v1  ;;  %v1338_v23 = vpop.permute.xlu0 %1337 }
 0xdfb   :  { %v1345_v25 = vmul.f32 %v4975_v42, %v1338_v23 }
 0xdfd   :  { %v1347_v39 = vadd.f32 %v1345_v25, %v1335_v30 }
 0xdff   :  { %v5110_v44 = vadd.f32 %v4985_v49, %v1347_v39 }
 0xeae   :  { %v2233_v29 = vpop.f32.mrf.mxu0 }
 0xeaf   :  { %v2234_v31 = vadd.f32 %v4922_v28, %v2233_v29 }
 0xeb0   :  { %v4000_v32 = vpop.f32.mrf.mxu0 }
 0xeb1   :  { %v2237_v43 = vmax.f32 %v2234_v31, 0.0 }
 0xeb3   :  { %4006 = vmatmul.mubr.msk.f32.vlgmr.msra.gmra.mxu1 %vm937_vm4, %v2237_v43 }
 0xeb4   :  { %4020 = vmatpush3.msra.mxu1 %v4867_v17  ;;  %4027 = vmatprep.mubr.msk.f32.mxu1 %vm4243_vm1, %v4242_v1 }
 0xeb5   :  { %4021 = vmatprep.subr.mxu1 %v4242_v1 }
 0xeb6   :  { %v2382_v42 = vpop.f32.mrf.mxu0  ;;  %4022 = vmatpush3.msra.mxu1 %v4872_v18 }
 0xeb7   :  { %v2386_v41 = vadd.f32 %v2382_v42, %v5110_v44  ;;  %4023 = vmatprep.subr.mxu1 %v4242_v1 }
 0xeb8   :  { %v4018_v45 = vpop.f32.mrf.mxu0  ;;  %4024 = vmatpush3.msra.mxu1 %v4879_v19 }
 0xeb9   :  { %4178 = vtanh.f32 %v2386_v41  ;;  %4025 = vmatprep.subr.mxu1 %v4242_v1  ;;  %v3449_v46 = vmul.f32 -1.442695, %v2386_v41 }
 0xeba   :  { %4026 = vmatpush3.msra.mxu1 %v4886_v20 }
 0xebb   :  { %4037 = vmatprep.subr.mxu1 %v4242_v1  ;;  %4180 = vpow2.f32 %v3449_v46 }
 0xec6   :  { %v4179_v49 = vpop.eup %4178 }
 0xec7   :  { %2399 = vrot.lane.b32.xlu1 %v4179_v49, %s4248_s5 }
 0xec8   :  { %v4181_v47 = vpop.eup %4180 }
 0xec9   :  { %v2390_v48 = vadd.f32 1.0, %v4181_v47 }
 0xecb   :  { %4182 = vrcp.f32 %v2390_v48 }
 0xed8   :  { %v4183_v50 = vpop.eup %4182 }
 0xed9   :  { %v2397_v58 = vmul.f32 %v4183_v50, %v2395_v36 }
 0xf39   :  { %v2400_v37 = vpop.permute.xlu1 %2399 }
 0xf3a   :  { %v2402_v52 = vmul.f32 %v4183_v50, %v2400_v37 }
 0xf3c   :  { %2404 = vrot.lane.b32.xlu0 %v2402_v52, %s4250_s3 }
 0xf73   :  { %v2307_v53 = vpop.f32.mrf.mxu1 }
 0xf74   :  { %v2308_v54 = vadd.f32 %v4969_v40, %v2307_v53 }
 0xf75   :  { %v4007_v57 = vpop.f32.mrf.mxu1 }
 0xf76   :  { %4184 = vtanh.f32 %v2308_v54 }
 0xf83   :  { %v4185_v55 = vpop.eup %4184 }
 0xf84   :  { %v2312_v56 = vadd.f32 6.0, %v4185_v55 }
 0xf86   :  { %2314 = vst.msk [vmem:[#allocation2 + $0x6] sm:$0x3] %vm1541_vm7, %v2312_v56 }
 0xfae   :  { %v2405_v59 = vpop.permute.xlu0 %2404 }
 0xfaf   :  { %v5125_v60 = vadd.f32 %v2405_v59, %v2397_v58 }
 0xfb1   :  { %4186 = vtanh.f32 %v5125_v60  ;;  %v2649_v25 = vrot.slane %v5125_v60, 6 }
 0xfbe   :  { %v4187_v61 = vpop.eup %4186 }
 0xfbf   :  { %2410 = vrot.lane.b32.xlu1 %v4187_v61, %s4248_s5 }
0x1031   :  { %v2411_v62 = vpop.permute.xlu1 %2410 }
0x1032   :  { %v2413_v63 = vmul.f32 %v4183_v50, %v2411_v62 }
0x1034   :  { %2415 = vrot.lane.b32.xlu0 %v2413_v63, %s4250_s3 }
0x10a6   :  { %v2416_v0 = vpop.permute.xlu0 %2415 }
0x10a7   :  { %4028 = vmatmul.mubr.msk.f32.vlgmr.msra.gmra.mxu1 %vm1250_vm6, %v2416_v0 }
0x10a8   :  { %4038 = vmatpush3.msra.mxu1 %v4928_v33  ;;  %4045 = vmatprep.mubr.msk.f32.mxu1 %vm4243_vm1, %v4242_v1 }
0x10a9   :  { %4039 = vmatprep.subr.mxu1 %v4242_v1 }
0x10aa   :  { %4040 = vmatpush3.msra.mxu1 %v4934_v34 }
0x10ab   :  { %4041 = vmatprep.subr.mxu1 %v4242_v1 }
0x10ac   :  { %4042 = vmatpush3.msra.mxu1 %v4943_v35 }
0x10ad   :  { %4043 = vmatprep.subr.mxu1 %v4242_v1 }
0x10ae   :  { %4044 = vmatpush3.msra.mxu1 %v4950_v38 }
0x10af   :  { %4046 = vmatmul.mubr.msk.f32.vlgmr.msra.gmra.mxu1 %vm1250_vm6, %v2416_v0  ;;  %4059 = vmatprep.subr.mxu1 %v4242_v1 }
0x10b0   :  { %4060 = vmatpush3.msra.mxu1 %v4908_v26  ;;  %4063 = vmatprep.mubr.msk.f32.mxu1 %vm4243_vm1, %v4242_v1 }
0x10b1   :  { %4061 = vmatprep.subr.mxu1 %v4242_v1 }
0x10b2   :  { %4062 = vmatpush3.msra.mxu1 %v4915_v27 }
0x10b3   :  { %4077 = vmatprep.subr.mxu1 %v4242_v1 }
0x1167   :  { %v2485_v2 = vpop.f32.mrf.mxu1 }
0x1168   :  { %v2486_v3 = vadd.f32 %v4922_v28, %v2485_v2 }
0x1169   :  { %v4029_v4 = vpop.f32.mrf.mxu1 }
0x116a   :  { %v2489_v51 = vmax.f32 %v2486_v3, 0.0 }
0x116c   :  { %4035 = vmatmul.mubr.msk.f32.vlgmr.msra.gmra.mxu0 %vm937_vm4, %v2489_v51 }
0x116d   :  { %4049 = vmatpush3.msra.mxu0 %v4867_v17  ;;  %4056 = vmatprep.mubr.msk.f32.mxu0 %vm4243_vm1, %v4242_v1 }
0x116e   :  { %4050 = vmatprep.subr.mxu0 %v4242_v1 }
0x116f   :  { %v2633_v5 = vpop.f32.mrf.mxu1  ;;  %4051 = vmatpush3.msra.mxu0 %v4872_v18 }
0x1170   :  { %v2638_v6 = vrot.slane %v2633_v5, 6  ;;  %4052 = vmatprep.subr.mxu0 %v4242_v1 }
0x1171   :  { %v4047_v7 = vpop.f32.mrf.mxu1  ;;  %4053 = vmatpush3.msra.mxu0 %v4879_v19 }
0x1172   :  { %v2640_v8 = vadd.f32 %v2638_v6, %v5110_v44  ;;  %4054 = vmatprep.subr.mxu0 %v4242_v1 }
0x1173   :  { %4055 = vmatpush3.msra.mxu0 %v4886_v20 }
0x1174   :  { %4188 = vtanh.f32 %v2640_v8  ;;  %4066 = vmatprep.subr.mxu0 %v4242_v1  ;;  %v3453_v10 = vmul.f32 -1.442695, %v2640_v8 }
0x1176   :  { %4190 = vpow2.f32 %v3453_v10 }
0x1181   :  { %v4189_v9 = vpop.eup %4188 }
0x1182   :  { %2653 = vrot.lane.b32.xlu1 %v4189_v9, %s4248_s5 }
0x1183   :  { %v4191_v11 = vpop.eup %4190 }
0x1184   :  { %v2644_v12 = vadd.f32 1.0, %v4191_v11 }
0x1186   :  { %4192 = vrcp.f32 %v2644_v12 }
0x1193   :  { %v4193_v13 = vpop.eup %4192 }
0x1194   :  { %v2651_v29 = vmul.f32 %v4193_v13, %v2649_v25 }
0x11f4   :  { %v2654_v14 = vpop.permute.xlu1 %2653 }
0x11f5   :  { %v2656_v15 = vmul.f32 %v4193_v13, %v2654_v14 }
0x11f7   :  { %2658 = vrot.lane.b32.xlu0 %v2656_v15, %s4250_s3 }
0x122c   :  { %v2559_v16 = vpop.f32.mrf.mxu0 }
0x122d   :  { %v2560_v21 = vadd.f32 %v4969_v40, %v2559_v16 }
0x122e   :  { %v4036_v22 = vpop.f32.mrf.mxu0 }
0x122f   :  { %4194 = vtanh.f32 %v2560_v21 }
0x123c   :  { %v4195_v23 = vpop.eup %4194 }
0x123d   :  { %v2564_v24 = vadd.f32 8.0, %v4195_v23 }
0x123f   :  { %2566 = vst.msk [vmem:[#allocation2 + $0x8] sm:$0x3] %vm1541_vm7, %v2564_v24 }
0x1269   :  { %v2659_v30 = vpop.permute.xlu0 %2658 }
0x126a   :  { %v5166_v31 = vadd.f32 %v2659_v30, %v2651_v29 }
0x126c   :  { %4196 = vtanh.f32 %v5166_v31  ;;  %v2904_v0 = vrot.slane %v5166_v31, 6 }
0x1279   :  { %v4197_v32 = vpop.eup %4196 }
0x127a   :  { %2664 = vrot.lane.b32.xlu1 %v4197_v32, %s4248_s5 }
0x12ec   :  { %v2665_v39 = vpop.permute.xlu1 %2664 }
0x12ed   :  { %v2667_v43 = vmul.f32 %v4193_v13, %v2665_v39 }
0x12ef   :  { %v2669_v42 = vrot.slane %v2667_v43, 2 }
0x12f1   :  { %2670 = vrot.lane.b32.xlu0 %v2669_v42, %s4250_s3 }
0x1363   :  { %v2671_v41 = vpop.permute.xlu0 %2670 }
0x1364   :  { %4057 = vmatmul.mubr.msk.f32.vlgmr.msra.gmra.mxu0 %vm1250_vm6, %v2671_v41 }
0x1365   :  { %4067 = vmatpush3.msra.mxu0 %v4928_v33  ;;  %4074 = vmatprep.mubr.msk.f32.mxu0 %vm4243_vm1, %v4242_v1 }
0x1366   :  { %4068 = vmatprep.subr.mxu0 %v4242_v1 }
0x1367   :  { %4069 = vmatpush3.msra.mxu0 %v4934_v34 }
0x1368   :  { %4070 = vmatprep.subr.mxu0 %v4242_v1 }
0x1369   :  { %4071 = vmatpush3.msra.mxu0 %v4943_v35 }
0x136a   :  { %4072 = vmatprep.subr.mxu0 %v4242_v1 }
0x136b   :  { %4073 = vmatpush3.msra.mxu0 %v4950_v38 }
0x136c   :  { %4075 = vmatmul.mubr.msk.f32.vlgmr.msra.gmra.mxu0 %vm1250_vm6, %v2671_v41  ;;  %4088 = vmatprep.subr.mxu0 %v4242_v1 }
0x136d   :  { %4089 = vmatpush3.msra.mxu0 %v4908_v26  ;;  %4092 = vmatprep.mubr.msk.f32.mxu0 %vm4243_vm1, %v4242_v1 }
0x136e   :  { %4090 = vmatprep.subr.mxu0 %v4242_v1 }
0x136f   :  { %4091 = vmatpush3.msra.mxu0 %v4915_v27 }
0x1370   :  { %4106 = vmatprep.subr.mxu0 %v4242_v1 }
0x1424   :  { %v2740_v45 = vpop.f32.mrf.mxu0 }
0x1425   :  { %v2741_v49 = vadd.f32 %v4922_v28, %v2740_v45 }
0x1426   :  { %v4058_v46 = vpop.f32.mrf.mxu0 }
0x1427   :  { %v2744_v47 = vmax.f32 %v2741_v49, 0.0 }
0x1429   :  { %4064 = vmatmul.mubr.msk.f32.vlgmr.msra.gmra.mxu1 %vm937_vm4, %v2744_v47 }
0x142a   :  { %4078 = vmatpush3.msra.mxu1 %v4867_v17  ;;  %4085 = vmatprep.mubr.msk.f32.mxu1 %vm4243_vm1, %v4242_v1 }
0x142b   :  { %4079 = vmatprep.subr.mxu1 %v4242_v1 }
0x142c   :  { %v2888_v48 = vpop.f32.mrf.mxu0  ;;  %4080 = vmatpush3.msra.mxu1 %v4872_v18 }
0x142d   :  { %v2893_v50 = vrot.slane %v2888_v48, 4  ;;  %4081 = vmatprep.subr.mxu1 %v4242_v1 }
0x142e   :  { %v4076_v37 = vpop.f32.mrf.mxu0  ;;  %4082 = vmatpush3.msra.mxu1 %v4879_v19 }
0x142f   :  { %v2895_v52 = vadd.f32 %v2893_v50, %v5110_v44  ;;  %4083 = vmatprep.subr.mxu1 %v4242_v1 }
0x1430   :  { %4084 = vmatpush3.msra.mxu1 %v4886_v20 }
0x1431   :  { %4198 = vtanh.f32 %v2895_v52  ;;  %4095 = vmatprep.subr.mxu1 %v4242_v1  ;;  %v3457_v54 = vmul.f32 -1.442695, %v2895_v52 }
0x1433   :  { %4200 = vpow2.f32 %v3457_v54 }
0x143e   :  { %v4199_v53 = vpop.eup %4198 }
0x143f   :  { %2908 = vrot.lane.b32.xlu1 %v4199_v53, %s4248_s5 }
0x1440   :  { %v4201_v57 = vpop.eup %4200 }
0x1441   :  { %v2899_v55 = vadd.f32 1.0, %v4201_v57 }
0x1443   :  { %4202 = vrcp.f32 %v2899_v55 }
0x1450   :  { %v4203_v56 = vpop.eup %4202 }
0x1451   :  { %v2906_v2 = vmul.f32 %v4203_v56, %v2904_v0 }
0x14b1   :  { %v2909_v36 = vpop.permute.xlu1 %2908 }
0x14b2   :  { %v2911_v58 = vmul.f32 %v4203_v56, %v2909_v36 }
0x14b4   :  { %2913 = vrot.lane.b32.xlu0 %v2911_v58, %s4250_s3 }
0x14e9   :  { %v2814_v59 = vpop.f32.mrf.mxu1 }
0x14ea   :  { %v2815_v60 = vadd.f32 %v4969_v40, %v2814_v59 }
0x14eb   :  { %v4065_v61 = vpop.f32.mrf.mxu1 }
0x14ec   :  { %4204 = vtanh.f32 %v2815_v60 }
0x14f9   :  { %v4205_v62 = vpop.eup %4204 }
0x14fa   :  { %v2819_v63 = vadd.f32 10.0, %v4205_v62 }
0x14fc   :  { %2821 = vst.msk [vmem:[#allocation2 + $0xa] sm:$0x3] %vm1541_vm7, %v2819_v63 }
0x1526   :  { %v2914_v3 = vpop.permute.xlu0 %2913 }
0x1527   :  { %v2916_v4 = vadd.f32 %v2914_v3, %v2906_v2 }
0x1529   :  { %4206 = vtanh.f32 %v2916_v4  ;;  %v3159_v21 = vrot.slane %v2916_v4, 6 }
0x1536   :  { %v4207_v51 = vpop.eup %4206 }
0x1537   :  { %2919 = vrot.lane.b32.xlu1 %v4207_v51, %s4248_s5 }
0x15a9   :  { %v2920_v5 = vpop.permute.xlu1 %2919 }
0x15aa   :  { %v2922_v6 = vmul.f32 %v4203_v56, %v2920_v5 }
0x15ac   :  { %v2924_v7 = vrot.slane %v2922_v6, 4 }
0x15ae   :  { %2925 = vrot.lane.b32.xlu0 %v2924_v7, %s4250_s3 }
0x1620   :  { %v2926_v8 = vpop.permute.xlu0 %2925 }
0x1621   :  { %4086 = vmatmul.mubr.msk.f32.vlgmr.msra.gmra.mxu1 %vm1250_vm6, %v2926_v8 }
0x1622   :  { %4096 = vmatpush3.msra.mxu1 %v4928_v33  ;;  %4103 = vmatprep.mubr.msk.f32.mxu1 %vm4243_vm1, %v4242_v1 }
0x1623   :  { %4097 = vmatprep.subr.mxu1 %v4242_v1 }
0x1624   :  { %4098 = vmatpush3.msra.mxu1 %v4934_v34 }
0x1625   :  { %4099 = vmatprep.subr.mxu1 %v4242_v1 }
0x1626   :  { %4100 = vmatpush3.msra.mxu1 %v4943_v35 }
0x1627   :  { %4101 = vmatprep.subr.mxu1 %v4242_v1 }
0x1628   :  { %4102 = vmatpush3.msra.mxu1 %v4950_v38 }
0x1629   :  { %4104 = vmatmul.mubr.msk.f32.vlgmr.msra.gmra.mxu1 %vm1250_vm6, %v2926_v8  ;;  %4117 = vmatprep.subr.mxu1 %v4242_v1 }
0x162a   :  { %4118 = vmatpush3.msra.mxu1 %v4908_v26  ;;  %4121 = vmatprep.mubr.msk.f32.mxu1 %vm4243_vm1, %v4242_v1 }
0x162b   :  { %4119 = vmatprep.subr.mxu1 %v4242_v1 }
0x162c   :  { %4120 = vmatpush3.msra.mxu1 %v4915_v27 }
0x16e1   :  { %v2995_v33 = vpop.f32.mrf.mxu1 }
0x16e2   :  { %v2996_v34 = vadd.f32 %v4922_v28, %v2995_v33 }
0x16e3   :  { %v4087_v35 = vpop.f32.mrf.mxu1 }
0x16e4   :  { %v2999_v9 = vmax.f32 %v2996_v34, 0.0 }
0x16e6   :  { %4093 = vmatmul.mubr.msk.f32.vlgmr.msra.gmra.mxu0 %vm937_vm4, %v2999_v9 }
0x16e7   :  { %4107 = vmatpush3.msra.mxu0 %v4867_v17  ;;  %4114 = vmatprep.mubr.msk.f32.mxu0 %vm4243_vm1, %v4242_v1 }
0x16e8   :  { %4108 = vmatprep.subr.mxu0 %v4242_v1 }
0x16e9   :  { %v3143_v26 = vpop.f32.mrf.mxu1  ;;  %4109 = vmatpush3.msra.mxu0 %v4872_v18 }
0x16ea   :  { %v3148_v38 = vrot.slane %v3143_v26, 2  ;;  %4110 = vmatprep.subr.mxu0 %v4242_v1 }
0x16eb   :  { %v4105_v27 = vpop.f32.mrf.mxu1  ;;  %4111 = vmatpush3.msra.mxu0 %v4879_v19 }
0x16ec   :  { %v3150_v10 = vadd.f32 %v3148_v38, %v5110_v44  ;;  %4112 = vmatprep.subr.mxu0 %v4242_v1 }
0x16ed   :  { %4113 = vmatpush3.msra.mxu0 %v4886_v20 }
0x16ee   :  { %4208 = vtanh.f32 %v3150_v10  ;;  %v3461_v11 = vmul.f32 -1.442695, %v3150_v10 }
0x16f0   :  { %4210 = vpow2.f32 %v3461_v11 }
0x16fb   :  { %v4209_v17 = vpop.eup %4208 }
0x16fc   :  { %3163 = vrot.lane.b32.xlu1 %v4209_v17, %s4248_s5 }
0x16fd   :  { %v4211_v12 = vpop.eup %4210 }
0x16fe   :  { %v3154_v18 = vadd.f32 1.0, %v4211_v12 }
0x1700   :  { %4212 = vrcp.f32 %v3154_v18 }
0x170d   :  { %v4213_v13 = vpop.eup %4212 }
0x170e   :  { %v3161_v22 = vmul.f32 %v4213_v13, %v3159_v21 }
0x176e   :  { %v3164_v14 = vpop.permute.xlu1 %3163 }
0x176f   :  { %v3166_v15 = vmul.f32 %v4213_v13, %v3164_v14 }
0x1771   :  { %3168 = vrot.lane.b32.xlu0 %v3166_v15, %s4250_s3 }
0x17a6   :  { %v3069_v19 = vpop.f32.mrf.mxu0 }
0x17a7   :  { %v3070_v44 = vadd.f32 %v4969_v40, %v3069_v19 }
0x17a8   :  { %v4094_v1 = vpop.f32.mrf.mxu0 }
0x17a9   :  { %4214 = vtanh.f32 %v3070_v44 }
0x17b6   :  { %v4215_v20 = vpop.eup %4214 }
0x17b7   :  { %v3074_v16 = vadd.f32 12.0, %v4215_v20 }
0x17b9   :  { %3076 = vst.msk [vmem:[#allocation2 + $0xc] sm:$0x3] %vm1541_vm7, %v3074_v16 }
0x17e3   :  { %v3169_v23 = vpop.permute.xlu0 %3168 }
0x17e4   :  { %v3171_v24 = vadd.f32 %v3169_v23, %v3161_v22 }
0x17e6   :  { %4216 = vtanh.f32 %v3171_v24 }
0x17f3   :  { %v4217_v25 = vpop.eup %4216 }
0x17f4   :  { %3174 = vrot.lane.b32.xlu1 %v4217_v25, %s4248_s5  ;;  %s3337_s5 = sshll.u32 %s4251_s28, 4  ;;  %s3338_s5 = int_to_ptr.vmem [resolvable:$true] %s3337_s5 }
0x17f5   :  { %s4220_s6 = scalar_lea.vmem %s3338_s5, 256  ;;  %p4225_p1 = scmp.lt.s32.totalorder %s3338_s5, %s3338_s5 }
0x17f6   :  { %p4221_p0 = scmp.ne.s32.totalorder %s3338_s5, %s4220_s6  ;;  %p4226_p2 = scmp.lt.s32.totalorder %s4220_s6, %s4220_s6 }
0x17f8   :  { %p4227_p3 = por %p4226_p2, %p4225_p1 }
0x17fa   :  { %p4228_p4 = pnand %p4227_p3, %p4221_p0 }
0x1866   :  { %v3175_v29 = vpop.permute.xlu1 %3174 }
0x1867   :  { %v3177_v30 = vmul.f32 %v4213_v13, %v3175_v29 }
0x1869   :  { %v3179_v31 = vrot.slane %v3177_v30, 6 }
0x186b   :  { %3180 = vrot.lane.b32.xlu0 %v3179_v31, %s4250_s3 }
0x18dd   :  { %v3181_v32 = vpop.permute.xlu0 %3180 }
0x18de   :  { %4115 = vmatmul.mubr.msk.f32.vlgmr.msra.gmra.mxu0 %vm1250_vm6, %v3181_v32 }
0x199e   :  { %v3250_v39 = vpop.f32.mrf.mxu0 }
0x199f   :  { %v3251_v43 = vadd.f32 %v4922_v28, %v3250_v39 }
0x19a0   :  { %v4116_v42 = vpop.f32.mrf.mxu0 }
0x19a1   :  { %v3254_v41 = vmax.f32 %v3251_v43, 0.0 }
0x19a3   :  { %4122 = vmatmul.mubr.msk.f32.vlgmr.msra.gmra.mxu1 %vm937_vm4, %v3254_v41 }
0x1a63   :  { %v3324_v45 = vpop.f32.mrf.mxu1 }
0x1a64   :  { %v3325_v49 = vadd.f32 %v4969_v40, %v3324_v45 }
0x1a65   :  { %v4123_v46 = vpop.f32.mrf.mxu1 }
0x1a66   :  { %4218 = vtanh.f32 %v3325_v49 }
0x1a73   :  { %v4219_v47 = vpop.eup %4218 }
0x1a74   :  { %v3329_v48 = vadd.f32 14.0, %v4219_v47 }
0x1a76   :  { %3331 = vst.msk [vmem:[#allocation2 + $0xe] sm:$0x3] %vm1541_vm7, %v3329_v48 }
0x1a77   :  { %4231 = shalt.err (!%p4228_p4)
}
0x1a78   :  { %s4252_s25 = smov 2  }
0x1a79   :  { %3343 = dma.vmem_to_hbm [thread:$0]  %s3338_s5, 256, %s5276_s22, [#allocation3], %s4250_s3, %s4250_s3, %s4252_s25  }
0x1a7a   :  { %4240 = dma.done.wait [#allocation3], 256  }
0x1a7b   :  { %4241 = vsyncadd [#allocation3], 4294967040 }
0x1a7c   :  { %3347 = vsyncpa [#allocation3], 1 }

</bundles_post_ra>
